<compile_context>
chip_gen: v5e
topology: v5e:2x2
jax: 0.10.0
libtpu: 0.0.40
codegen_flags: <defaults>
</compile_context>

<pallas_src>
import jax
import jax.numpy as jnp
from jax.experimental import pallas as pl
from jax.experimental.pallas import tpu as pltpu


def _round_up(x, m):
    return (x + m - 1) // m * m


# -----------------------------------------------------------------------------
# Kernel
# -----------------------------------------------------------------------------
def _decoder_kernel(x_ref, h0_ref, c0_ref, h1_ref, c1_ref,
                    w0_ref, b0_ref, w1_ref, b1_ref,
                    wp_ref, bp_ref,
                    logits_ref, h0o_ref, c0o_ref, h1o_ref, c1o_ref,
                    h1_bf16):
    """Grid axis 0 tiles the (padded) vocab dimension of the projection.

    The LSTM cell math runs only on the first vocab tile (it is independent of
    the vocab tile); its result is cached in a VMEM scratch (bf16) and reused by
    every projection tile.  State outputs use a constant block index across the
    grid axis, so they stay VMEM-resident and are written back once at the end.
    """
    HP = h0_ref.shape[-1]          # padded hidden size (multiple of 128)
    j = pl.program_id(0)

    @pl.when(j == 0)
    def _lstm():
        def cell(xh_bf16, c, w_ref, b_ref):
            # fused gates: one MXU matmul per layer, f32 accumulation
            gates = (jnp.dot(xh_bf16, w_ref[...],
                             preferred_element_type=jnp.float32)
                     + b_ref[...])
            # PyTorch gate order: i, f, g, o ; each gate is a full 128-lane block
            i_g = jax.nn.sigmoid(gates[:, 0 * HP:1 * HP])
            f_g = jax.nn.sigmoid(gates[:, 1 * HP:2 * HP])
            g_g = jnp.tanh(gates[:, 2 * HP:3 * HP])
            o_g = jax.nn.sigmoid(gates[:, 3 * HP:4 * HP])
            c_new = f_g * c + i_g * g_g
            h_new = o_g * jnp.tanh(c_new)
            return h_new, c_new

        # layer 0: input = [x, h0]
        xh0 = jnp.concatenate(
            [x_ref[...], h0_ref[...].astype(jnp.bfloat16)], axis=-1)
        h0n, c0n = cell(xh0, c0_ref[...], w0_ref, b0_ref)

        # layer 1: input = [h0n, h1]
        xh1 = jnp.concatenate(
            [h0n.astype(jnp.bfloat16), h1_ref[...].astype(jnp.bfloat16)], axis=-1)
        h1n, c1n = cell(xh1, c1_ref[...], w1_ref, b1_ref)

        # lane-dense state outputs (f32), written once
        h0o_ref[...] = h0n
        c0o_ref[...] = c0n
        h1o_ref[...] = h1n
        c1o_ref[...] = c1n
        # cache top-layer hidden in bf16 for the projection tiles
        h1_bf16[...] = h1n.astype(jnp.bfloat16)

    # projection for this vocab tile
    logits_ref[...] = (jnp.dot(h1_bf16[...], wp_ref[...],
                               preferred_element_type=jnp.float32)
                       + bp_ref[...])


# -----------------------------------------------------------------------------
# Parameter construction / packing
# -----------------------------------------------------------------------------
def init_params(key, vocab_size, embed_size, h_size):
    """Raw parameters in PyTorch nn.LSTM / nn.Linear layout (f32, unpadded)."""
    k = 1.0 / float(h_size) ** 0.5
    keys = jax.random.split(key, 10)
    u = lambda kk, shape: jax.random.uniform(kk, shape, jnp.float32, -k, k)
    return {
        'wih0': u(keys[0], (4 * h_size, embed_size)),   # weight_ih_l0
        'whh0': u(keys[1], (4 * h_size, h_size)),       # weight_hh_l0
        'bih0': u(keys[2], (4 * h_size,)),
        'bhh0': u(keys[3], (4 * h_size,)),
        'wih1': u(keys[4], (4 * h_size, h_size)),       # weight_ih_l1
        'whh1': u(keys[5], (4 * h_size, h_size)),       # weight_hh_l1
        'bih1': u(keys[6], (4 * h_size,)),
        'bhh1': u(keys[7], (4 * h_size,)),
        'wp':   u(keys[8], (vocab_size, h_size)),       # proj.weight
        'bp':   u(keys[9], (vocab_size,)),              # proj.bias
    }


def pack_params(raw):
    """Fuse wih/whh, pad every dim to (8,128)-friendly sizes, cast weights to bf16."""
    E = raw['wih0'].shape[1]
    H = raw['whh0'].shape[1]
    V = raw['wp'].shape[0]
    EP = _round_up(E, 128)
    HP = _round_up(H, 128)
    VP = _round_up(V, 128)

    def pad_gate_w(w, in_dim, in_pad):
        # w: [4H, in_dim] -> per-gate pad -> transpose -> [in_pad, 4*HP]
        w4 = w.reshape(4, H, in_dim)
        w4 = jnp.pad(w4, ((0, 0), (0, HP - H), (0, in_pad - in_dim)))
        return w4.reshape(4 * HP, in_pad).T

    def pad_gate_b(b):
        b4 = b.reshape(4, H)
        b4 = jnp.pad(b4, ((0, 0), (0, HP - H)))
        return b4.reshape(1, 4 * HP)

    w0 = jnp.concatenate([pad_gate_w(raw['wih0'], E, EP),
                          pad_gate_w(raw['whh0'], H, HP)],
                         axis=0).astype(jnp.bfloat16)      # [(EP+HP), 4*HP]
    b0 = pad_gate_b(raw['bih0'] + raw['bhh0']).astype(jnp.float32)
    w1 = jnp.concatenate([pad_gate_w(raw['wih1'], H, HP),
                          pad_gate_w(raw['whh1'], H, HP)],
                         axis=0).astype(jnp.bfloat16)      # [2*HP, 4*HP]
    b1 = pad_gate_b(raw['bih1'] + raw['bhh1']).astype(jnp.float32)
    wp = jnp.pad(raw['wp'], ((0, VP - V), (0, HP - H))).T.astype(jnp.bfloat16)
    bp = jnp.pad(raw['bp'], (0, VP - V)).reshape(1, VP).astype(jnp.float32)

    return {'w0': w0, 'b0': b0, 'w1': w1, 'b1': b1, 'wp': wp, 'bp': bp,
            'dims': (E, H, V, EP, HP, VP)}


# -----------------------------------------------------------------------------
# Forward wrapper
# -----------------------------------------------------------------------------
def decoder_forward(packed, f, hs=None):
    """f: [B, 1, E] -> (logits [B, 1, V], (h_n [2,B,H], c_n [2,B,H]))"""
    E, H, V, EP, HP, VP = packed['dims']
    B, T, Ein = f.shape
    assert T == 1 and Ein == E
    BP = _round_up(B, 8)

    # pad inputs (zero padding is inert for the LSTM/projection math)
    x = jnp.pad(f.reshape(B, E).astype(jnp.float32),
                ((0, BP - B), (0, EP - E))).astype(jnp.bfloat16)

    if hs is None:
        h = jnp.zeros((2, B, H), jnp.float32)
        c = jnp.zeros((2, B, H), jnp.float32)
    else:
        h, c = hs
    pad_state = lambda s: jnp.pad(s.astype(jnp.float32),
                                  ((0, BP - B), (0, HP - H)))
    h0, h1 = pad_state(h[0]), pad_state(h[1])
    c0, c1 = pad_state(c[0]), pad_state(c[1])

    # vocab-tile size for streaming the projection weight (largest of 512/256/128
    # that divides VP); VP is a multiple of 128 so this always succeeds.
    TV = next(t for t in (512, 256, 128) if VP % t == 0)
    grid = (VP // TV,)

    const2d = lambda j: (0, 0)   # blocks that are resident across vocab tiles

    out_shapes = (
        jax.ShapeDtypeStruct((BP, VP), jnp.float32),   # logits (padded)
        jax.ShapeDtypeStruct((BP, HP), jnp.float32),   # h0'
        jax.ShapeDtypeStruct((BP, HP), jnp.float32),   # c0'
        jax.ShapeDtypeStruct((BP, HP), jnp.float32),   # h1'
        jax.ShapeDtypeStruct((BP, HP), jnp.float32),   # c1'
    )

    in_specs = [
        pl.BlockSpec((BP, EP), const2d),                 # x (bf16)
        pl.BlockSpec((BP, HP), const2d),                 # h0
        pl.BlockSpec((BP, HP), const2d),                 # c0
        pl.BlockSpec((BP, HP), const2d),                 # h1
        pl.BlockSpec((BP, HP), const2d),                 # c1
        pl.BlockSpec((EP + HP, 4 * HP), const2d),        # w0 (fused, bf16)
        pl.BlockSpec((1, 4 * HP), const2d),              # b0
        pl.BlockSpec((2 * HP, 4 * HP), const2d),         # w1 (fused, bf16)
        pl.BlockSpec((1, 4 * HP), const2d),              # b1
        pl.BlockSpec((HP, TV), lambda j: (0, j)),        # wp tile (streamed)
        pl.BlockSpec((1, TV), lambda j: (0, j)),         # bp tile
    ]
    out_specs = (
        pl.BlockSpec((BP, TV), lambda j: (0, j)),        # logits tile
        pl.BlockSpec((BP, HP), const2d),                 # h0'
        pl.BlockSpec((BP, HP), const2d),                 # c0'
        pl.BlockSpec((BP, HP), const2d),                 # h1'
        pl.BlockSpec((BP, HP), const2d),                 # c1'
    )

    logits_p, h0n, c0n, h1n, c1n = pl.pallas_call(
        _decoder_kernel,
        out_shape=out_shapes,
        grid_spec=pltpu.PrefetchScalarGridSpec(
            num_scalar_prefetch=0,
            grid=grid,
            in_specs=in_specs,
            out_specs=out_specs,
            scratch_shapes=[pltpu.VMEM((BP, HP), jnp.bfloat16)],
        ),
        # state outputs are resident across the vocab axis -> "arbitrary"
        compiler_params=pltpu.CompilerParams(
            dimension_semantics=("arbitrary",)),
    )(x, h0, c0, h1, c1,
      packed['w0'], packed['b0'], packed['w1'], packed['b1'],
      packed['wp'], packed['bp'])

    logits = logits_p[:B, :V].reshape(B, 1, V)
    h_n = jnp.stack([h0n[:B, :H], h1n[:B, :H]])
    c_n = jnp.stack([c0n[:B, :H], c1n[:B, :H]])
    return logits, (h_n, c_n)


# -----------------------------------------------------------------------------
# Pure-JAX reference (f32, PyTorch layout) for correctness checking
# -----------------------------------------------------------------------------
def _reference_forward(raw, f, hs=None):
    B, _, E = f.shape
    H = raw['whh0'].shape[1]
    x = f.reshape(B, E).astype(jnp.float32)
    if hs is None:
        h = jnp.zeros((2, B, H), jnp.float32)
        c = jnp.zeros((2, B, H), jnp.float32)
    else:
        h, c = hs

    def cell(x_in, hh, cc, wih, whh, bih, bhh):
        g = x_in @ wih.T + hh @ whh.T + bih + bhh
        i, fg, gg, o = jnp.split(g, 4, axis=-1)
        c_new = jax.nn.sigmoid(fg) * cc + jax.nn.sigmoid(i) * jnp.tanh(gg)
        h_new = jax.nn.sigmoid(o) * jnp.tanh(c_new)
        return h_new, c_new

    h0n, c0n = cell(x, h[0], c[0], raw['wih0'], raw['whh0'],
                    raw['bih0'], raw['bhh0'])
    h1n, c1n = cell(h0n, h[1], c[1], raw['wih1'], raw['whh1'],
                    raw['bih1'], raw['bhh1'])
    logits = h1n @ raw['wp'].T + raw['bp']
    return logits.reshape(B, 1, -1), (jnp.stack([h0n, h1n]),
                                      jnp.stack([c0n, c1n]))


if __name__ == "__main__":
    B, E, H, V = 2, 32, 32, 16   # batch, embed_size, h_size, vocab_size
    key = jax.random.PRNGKey(0)
    k_param, k_in = jax.random.split(key)

    raw = init_params(k_param, vocab_size=V, embed_size=E, h_size=H)
    packed = pack_params(raw)
    f = jax.random.normal(k_in, (B, 1, E), dtype=jnp.float32)

    # step 1: no initial state
    logits, (h_n, c_n) = decoder_forward(packed, f, hs=None)
    jax.block_until_ready((logits, h_n, c_n))

    ref_logits, (ref_h, ref_c) = _reference_forward(raw, f, hs=None)
    assert logits.shape == (B, 1, V)
    assert h_n.shape == (2, B, H) and c_n.shape == (2, B, H)
    # bf16 MXU operands with f32 accumulation -> relaxed tolerance vs f32 reference
    assert jnp.allclose(logits, ref_logits, rtol=5e-2, atol=5e-2)
    assert jnp.allclose(h_n, ref_h, rtol=5e-2, atol=5e-2)
    assert jnp.allclose(c_n, ref_c, rtol=5e-2, atol=5e-2)

    # step 2: exercise the hs path (both start from the f32 reference state)
    logits2, (h_n2, c_n2) = decoder_forward(packed, f, hs=(ref_h, ref_c))
    jax.block_until_ready((logits2, h_n2, c_n2))
    ref_logits2, (ref_h2, ref_c2) = _reference_forward(raw, f, hs=(ref_h, ref_c))
    assert jnp.allclose(logits2, ref_logits2, rtol=5e-2, atol=5e-2)
    assert jnp.allclose(h_n2, ref_h2, rtol=5e-2, atol=5e-2)
    assert jnp.allclose(c_n2, ref_c2, rtol=5e-2, atol=5e-2)

    print("KERNEL_OK")
</pallas_src>

<mosaic_0001>
module attributes {stable_mosaic.version = 11 : i64} {
  func.func @_decoder_kernel(%arg0: i32, %arg1: memref<8x128xbf16, #tpu.memory_space<vmem>>, %arg2: memref<8x128xf32, #tpu.memory_space<vmem>>, %arg3: memref<8x128xf32, #tpu.memory_space<vmem>>, %arg4: memref<8x128xf32, #tpu.memory_space<vmem>>, %arg5: memref<8x128xf32, #tpu.memory_space<vmem>>, %arg6: memref<256x512xbf16, #tpu.memory_space<vmem>>, %arg7: memref<1x512xf32, #tpu.memory_space<vmem>>, %arg8: memref<256x512xbf16, #tpu.memory_space<vmem>>, %arg9: memref<1x512xf32, #tpu.memory_space<vmem>>, %arg10: memref<128x128xbf16, #tpu.memory_space<vmem>>, %arg11: memref<1x128xf32, #tpu.memory_space<vmem>>, %arg12: memref<8x128xf32, #tpu.memory_space<vmem>>, %arg13: memref<8x128xf32, #tpu.memory_space<vmem>>, %arg14: memref<8x128xf32, #tpu.memory_space<vmem>>, %arg15: memref<8x128xf32, #tpu.memory_space<vmem>>, %arg16: memref<8x128xf32, #tpu.memory_space<vmem>>, %arg17: memref<8x128xbf16, #tpu.memory_space<vmem>>) attributes {dimension_semantics = [#tpu.dimension_semantics<arbitrary>], iteration_bounds = array<i64: 1>, scalar_prefetch = 0 : i64, scratch_operands = 1 : i64, tpu.core_type = #tpu.core_type<tc>, window_params = [{pipeline_mode = #tpu.pipeline_mode<synchronous>, transform_indices = @transform_0, window_bounds = array<i64: 8, 128>}, {pipeline_mode = #tpu.pipeline_mode<synchronous>, transform_indices = @transform_1, window_bounds = array<i64: 8, 128>}, {pipeline_mode = #tpu.pipeline_mode<synchronous>, transform_indices = @transform_2, window_bounds = array<i64: 8, 128>}, {pipeline_mode = #tpu.pipeline_mode<synchronous>, transform_indices = @transform_3, window_bounds = array<i64: 8, 128>}, {pipeline_mode = #tpu.pipeline_mode<synchronous>, transform_indices = @transform_4, window_bounds = array<i64: 8, 128>}, {pipeline_mode = #tpu.pipeline_mode<synchronous>, transform_indices = @transform_5, window_bounds = array<i64: 256, 512>}, {pipeline_mode = #tpu.pipeline_mode<synchronous>, transform_indices = @transform_6, window_bounds = array<i64: 1, 512>}, {pipeline_mode = #tpu.pipeline_mode<synchronous>, transform_indices = @transform_7, window_bounds = array<i64: 256, 512>}, {pipeline_mode = #tpu.pipeline_mode<synchronous>, transform_indices = @transform_8, window_bounds = array<i64: 1, 512>}, {transform_indices = @transform_9, window_bounds = array<i64: 128, 128>}, {transform_indices = @transform_10, window_bounds = array<i64: 1, 128>}, {transform_indices = @transform_11, window_bounds = array<i64: 8, 128>}, {pipeline_mode = #tpu.pipeline_mode<synchronous>, transform_indices = @transform_12, window_bounds = array<i64: 8, 128>}, {pipeline_mode = #tpu.pipeline_mode<synchronous>, transform_indices = @transform_13, window_bounds = array<i64: 8, 128>}, {pipeline_mode = #tpu.pipeline_mode<synchronous>, transform_indices = @transform_14, window_bounds = array<i64: 8, 128>}, {pipeline_mode = #tpu.pipeline_mode<synchronous>, transform_indices = @transform_15, window_bounds = array<i64: 8, 128>}]} {
    %c0_i32 = arith.constant 0 : i32
    %0 = arith.cmpi eq, %arg0, %c0_i32 : i32
    %1 = arith.extui %0 : i1 to i32
    %c0_i32_0 = arith.constant 0 : i32
    %2 = arith.cmpi ne, %1, %c0_i32_0 : i32
    scf.if %2 {
      %c0_8 = arith.constant 0 : index
      %c0_9 = arith.constant 0 : index
      %10 = vector.load %arg1[%c0_8, %c0_9] : memref<8x128xbf16, #tpu.memory_space<vmem>>, vector<8x128xbf16>
      %c0_10 = arith.constant 0 : index
      %c0_11 = arith.constant 0 : index
      %11 = vector.load %arg2[%c0_10, %c0_11] : memref<8x128xf32, #tpu.memory_space<vmem>>, vector<8x128xf32>
      %12 = arith.truncf %11 : vector<8x128xf32> to vector<8x128xbf16>
      %13 = tpu.concatenate %10, %12 in 1 : vector<8x128xbf16>, vector<8x128xbf16> -> vector<8x256xbf16>
      %c0_12 = arith.constant 0 : index
      %c0_13 = arith.constant 0 : index
      %14 = vector.load %arg3[%c0_12, %c0_13] : memref<8x128xf32, #tpu.memory_space<vmem>>, vector<8x128xf32>
      %c0_14 = arith.constant 0 : index
      %c0_15 = arith.constant 0 : index
      %15 = vector.load %arg6[%c0_14, %c0_15] : memref<256x512xbf16, #tpu.memory_space<vmem>>, vector<256x512xbf16>
      %cst_16 = arith.constant dense<0.000000e+00> : vector<8x512xf32>
      %16 = tpu.matmul %13, %15, %cst_16 {dimension_numbers = #tpu.dot_dimension_numbers<[1], [0], [0], [1], [0, 0, 1, 1], [], []>} : vector<8x256xbf16>, vector<256x512xbf16>, vector<8x512xf32> -> vector<8x512xf32>
      %c0_17 = arith.constant 0 : index
      %c0_18 = arith.constant 0 : index
      %17 = vector.load %arg7[%c0_17, %c0_18] : memref<1x512xf32, #tpu.memory_space<vmem>>, vector<1x512xf32>
      %18 = vector.broadcast %17 : vector<1x512xf32> to vector<8x512xf32>
      %19 = arith.addf %16, %18 : vector<8x512xf32>
      %20 = vector.extract_strided_slice %19 {offsets = [0, 0], sizes = [8, 128], strides = [1, 1]} : vector<8x512xf32> to vector<8x128xf32>
      %21 = arith.negf %20 : vector<8x128xf32>
      %22 = math.exp %21 : vector<8x128xf32>
      %cst_19 = arith.constant 1.000000e+00 : f32
      %23 = vector.broadcast %cst_19 : f32 to vector<8x128xf32>
      %24 = arith.addf %23, %22 : vector<8x128xf32>
      %25 = arith.divf %23, %24 : vector<8x128xf32>
      %26 = vector.extract_strided_slice %19 {offsets = [0, 128], sizes = [8, 128], strides = [1, 1]} : vector<8x512xf32> to vector<8x128xf32>
      %27 = arith.negf %26 : vector<8x128xf32>
      %28 = math.exp %27 : vector<8x128xf32>
      %cst_20 = arith.constant 1.000000e+00 : f32
      %29 = vector.broadcast %cst_20 : f32 to vector<8x128xf32>
      %30 = arith.addf %29, %28 : vector<8x128xf32>
      %31 = arith.divf %29, %30 : vector<8x128xf32>
      %32 = vector.extract_strided_slice %19 {offsets = [0, 256], sizes = [8, 128], strides = [1, 1]} : vector<8x512xf32> to vector<8x128xf32>
      %33 = math.tanh %32 : vector<8x128xf32>
      %34 = vector.extract_strided_slice %19 {offsets = [0, 384], sizes = [8, 128], strides = [1, 1]} : vector<8x512xf32> to vector<8x128xf32>
      %35 = arith.negf %34 : vector<8x128xf32>
      %36 = math.exp %35 : vector<8x128xf32>
      %cst_21 = arith.constant 1.000000e+00 : f32
      %37 = vector.broadcast %cst_21 : f32 to vector<8x128xf32>
      %38 = arith.addf %37, %36 : vector<8x128xf32>
      %39 = arith.divf %37, %38 : vector<8x128xf32>
      %40 = arith.mulf %31, %14 : vector<8x128xf32>
      %41 = arith.mulf %25, %33 : vector<8x128xf32>
      %42 = arith.addf %40, %41 : vector<8x128xf32>
      %43 = math.tanh %42 : vector<8x128xf32>
      %44 = arith.mulf %39, %43 : vector<8x128xf32>
      %45 = arith.truncf %44 : vector<8x128xf32> to vector<8x128xbf16>
      %c0_22 = arith.constant 0 : index
      %c0_23 = arith.constant 0 : index
      %46 = vector.load %arg4[%c0_22, %c0_23] : memref<8x128xf32, #tpu.memory_space<vmem>>, vector<8x128xf32>
      %47 = arith.truncf %46 : vector<8x128xf32> to vector<8x128xbf16>
      %48 = tpu.concatenate %45, %47 in 1 : vector<8x128xbf16>, vector<8x128xbf16> -> vector<8x256xbf16>
      %c0_24 = arith.constant 0 : index
      %c0_25 = arith.constant 0 : index
      %49 = vector.load %arg5[%c0_24, %c0_25] : memref<8x128xf32, #tpu.memory_space<vmem>>, vector<8x128xf32>
      %c0_26 = arith.constant 0 : index
      %c0_27 = arith.constant 0 : index
      %50 = vector.load %arg8[%c0_26, %c0_27] : memref<256x512xbf16, #tpu.memory_space<vmem>>, vector<256x512xbf16>
      %cst_28 = arith.constant dense<0.000000e+00> : vector<8x512xf32>
      %51 = tpu.matmul %48, %50, %cst_28 {dimension_numbers = #tpu.dot_dimension_numbers<[1], [0], [0], [1], [0, 0, 1, 1], [], []>} : vector<8x256xbf16>, vector<256x512xbf16>, vector<8x512xf32> -> vector<8x512xf32>
      %c0_29 = arith.constant 0 : index
      %c0_30 = arith.constant 0 : index
      %52 = vector.load %arg9[%c0_29, %c0_30] : memref<1x512xf32, #tpu.memory_space<vmem>>, vector<1x512xf32>
      %53 = vector.broadcast %52 : vector<1x512xf32> to vector<8x512xf32>
      %54 = arith.addf %51, %53 : vector<8x512xf32>
      %55 = vector.extract_strided_slice %54 {offsets = [0, 0], sizes = [8, 128], strides = [1, 1]} : vector<8x512xf32> to vector<8x128xf32>
      %56 = arith.negf %55 : vector<8x128xf32>
      %57 = math.exp %56 : vector<8x128xf32>
      %cst_31 = arith.constant 1.000000e+00 : f32
      %58 = vector.broadcast %cst_31 : f32 to vector<8x128xf32>
      %59 = arith.addf %58, %57 : vector<8x128xf32>
      %60 = arith.divf %58, %59 : vector<8x128xf32>
      %61 = vector.extract_strided_slice %54 {offsets = [0, 128], sizes = [8, 128], strides = [1, 1]} : vector<8x512xf32> to vector<8x128xf32>
      %62 = arith.negf %61 : vector<8x128xf32>
      %63 = math.exp %62 : vector<8x128xf32>
      %cst_32 = arith.constant 1.000000e+00 : f32
      %64 = vector.broadcast %cst_32 : f32 to vector<8x128xf32>
      %65 = arith.addf %64, %63 : vector<8x128xf32>
      %66 = arith.divf %64, %65 : vector<8x128xf32>
      %67 = vector.extract_strided_slice %54 {offsets = [0, 256], sizes = [8, 128], strides = [1, 1]} : vector<8x512xf32> to vector<8x128xf32>
      %68 = math.tanh %67 : vector<8x128xf32>
      %69 = vector.extract_strided_slice %54 {offsets = [0, 384], sizes = [8, 128], strides = [1, 1]} : vector<8x512xf32> to vector<8x128xf32>
      %70 = arith.negf %69 : vector<8x128xf32>
      %71 = math.exp %70 : vector<8x128xf32>
      %cst_33 = arith.constant 1.000000e+00 : f32
      %72 = vector.broadcast %cst_33 : f32 to vector<8x128xf32>
      %73 = arith.addf %72, %71 : vector<8x128xf32>
      %74 = arith.divf %72, %73 : vector<8x128xf32>
      %75 = arith.mulf %66, %49 : vector<8x128xf32>
      %76 = arith.mulf %60, %68 : vector<8x128xf32>
      %77 = arith.addf %75, %76 : vector<8x128xf32>
      %78 = math.tanh %77 : vector<8x128xf32>
      %79 = arith.mulf %74, %78 : vector<8x128xf32>
      %c0_34 = arith.constant 0 : index
      %c0_35 = arith.constant 0 : index
      %80 = vector.load %arg13[%c0_34, %c0_35] : memref<8x128xf32, #tpu.memory_space<vmem>>, vector<8x128xf32>
      tpu.vector_store %arg13[%c0_34, %c0_35], %44 {strides = array<i32>} : memref<8x128xf32, #tpu.memory_space<vmem>>, vector<8x128xf32>,
      %c0_36 = arith.constant 0 : index
      %c0_37 = arith.constant 0 : index
      %81 = vector.load %arg14[%c0_36, %c0_37] : memref<8x128xf32, #tpu.memory_space<vmem>>, vector<8x128xf32>
      tpu.vector_store %arg14[%c0_36, %c0_37], %42 {strides = array<i32>} : memref<8x128xf32, #tpu.memory_space<vmem>>, vector<8x128xf32>,
      %c0_38 = arith.constant 0 : index
      %c0_39 = arith.constant 0 : index
      %82 = vector.load %arg15[%c0_38, %c0_39] : memref<8x128xf32, #tpu.memory_space<vmem>>, vector<8x128xf32>
      tpu.vector_store %arg15[%c0_38, %c0_39], %79 {strides = array<i32>} : memref<8x128xf32, #tpu.memory_space<vmem>>, vector<8x128xf32>,
      %c0_40 = arith.constant 0 : index
      %c0_41 = arith.constant 0 : index
      %83 = vector.load %arg16[%c0_40, %c0_41] : memref<8x128xf32, #tpu.memory_space<vmem>>, vector<8x128xf32>
      tpu.vector_store %arg16[%c0_40, %c0_41], %77 {strides = array<i32>} : memref<8x128xf32, #tpu.memory_space<vmem>>, vector<8x128xf32>,
      %84 = arith.truncf %79 : vector<8x128xf32> to vector<8x128xbf16>
      %c0_42 = arith.constant 0 : index
      %c0_43 = arith.constant 0 : index
      %85 = vector.load %arg17[%c0_42, %c0_43] : memref<8x128xbf16, #tpu.memory_space<vmem>>, vector<8x128xbf16>
      tpu.vector_store %arg17[%c0_42, %c0_43], %84 {strides = array<i32>} : memref<8x128xbf16, #tpu.memory_space<vmem>>, vector<8x128xbf16>,
    } else {
    }
    %c0 = arith.constant 0 : index
    %c0_1 = arith.constant 0 : index
    %3 = vector.load %arg17[%c0, %c0_1] : memref<8x128xbf16, #tpu.memory_space<vmem>>, vector<8x128xbf16>
    %c0_2 = arith.constant 0 : index
    %c0_3 = arith.constant 0 : index
    %4 = vector.load %arg10[%c0_2, %c0_3] : memref<128x128xbf16, #tpu.memory_space<vmem>>, vector<128x128xbf16>
    %cst = arith.constant dense<0.000000e+00> : vector<8x128xf32>
    %5 = tpu.matmul %3, %4, %cst {dimension_numbers = #tpu.dot_dimension_numbers<[1], [0], [0], [1], [0, 0, 1, 1], [], []>} : vector<8x128xbf16>, vector<128x128xbf16>, vector<8x128xf32> -> vector<8x128xf32>
    %c0_4 = arith.constant 0 : index
    %c0_5 = arith.constant 0 : index
    %6 = vector.load %arg11[%c0_4, %c0_5] : memref<1x128xf32, #tpu.memory_space<vmem>>, vector<1x128xf32>
    %7 = vector.broadcast %6 : vector<1x128xf32> to vector<8x128xf32>
    %8 = arith.addf %5, %7 : vector<8x128xf32>
    %c0_6 = arith.constant 0 : index
    %c0_7 = arith.constant 0 : index
    %9 = vector.load %arg12[%c0_6, %c0_7] : memref<8x128xf32, #tpu.memory_space<vmem>>, vector<8x128xf32>
    tpu.vector_store %arg12[%c0_6, %c0_7], %8 {strides = array<i32>} : memref<8x128xf32, #tpu.memory_space<vmem>>, vector<8x128xf32>,
    return
  }
  func.func @transform_0(%arg0: i32) -> (i32, i32) {
    %c0_i32 = arith.constant 0 : i32
    %c0_i32_0 = arith.constant 0 : i32
    %c0_i32_1 = arith.constant 0 : i32
    return %c0_i32, %c0_i32_0 : i32, i32
  }
  func.func @transform_1(%arg0: i32) -> (i32, i32) {
    %c0_i32 = arith.constant 0 : i32
    %c0_i32_0 = arith.constant 0 : i32
    %c0_i32_1 = arith.constant 0 : i32
    return %c0_i32, %c0_i32_0 : i32, i32
  }
  func.func @transform_2(%arg0: i32) -> (i32, i32) {
    %c0_i32 = arith.constant 0 : i32
    %c0_i32_0 = arith.constant 0 : i32
    %c0_i32_1 = arith.constant 0 : i32
    return %c0_i32, %c0_i32_0 : i32, i32
  }
  func.func @transform_3(%arg0: i32) -> (i32, i32) {
    %c0_i32 = arith.constant 0 : i32
    %c0_i32_0 = arith.constant 0 : i32
    %c0_i32_1 = arith.constant 0 : i32
    return %c0_i32, %c0_i32_0 : i32, i32
  }
  func.func @transform_4(%arg0: i32) -> (i32, i32) {
    %c0_i32 = arith.constant 0 : i32
    %c0_i32_0 = arith.constant 0 : i32
    %c0_i32_1 = arith.constant 0 : i32
    return %c0_i32, %c0_i32_0 : i32, i32
  }
  func.func @transform_5(%arg0: i32) -> (i32, i32) {
    %c0_i32 = arith.constant 0 : i32
    %c0_i32_0 = arith.constant 0 : i32
    %c0_i32_1 = arith.constant 0 : i32
    return %c0_i32, %c0_i32_0 : i32, i32
  }
  func.func @transform_6(%arg0: i32) -> (i32, i32) {
    %c0_i32 = arith.constant 0 : i32
    %c0_i32_0 = arith.constant 0 : i32
    %c0_i32_1 = arith.constant 0 : i32
    return %c0_i32, %c0_i32_0 : i32, i32
  }
  func.func @transform_7(%arg0: i32) -> (i32, i32) {
    %c0_i32 = arith.constant 0 : i32
    %c0_i32_0 = arith.constant 0 : i32
    %c0_i32_1 = arith.constant 0 : i32
    return %c0_i32, %c0_i32_0 : i32, i32
  }
  func.func @transform_8(%arg0: i32) -> (i32, i32) {
    %c0_i32 = arith.constant 0 : i32
    %c0_i32_0 = arith.constant 0 : i32
    %c0_i32_1 = arith.constant 0 : i32
    return %c0_i32, %c0_i32_0 : i32, i32
  }
  func.func @transform_9(%arg0: i32) -> (i32, i32) {
    %c0_i32 = arith.constant 0 : i32
    %c0_i32_0 = arith.constant 0 : i32
    return %c0_i32, %arg0 : i32, i32
  }
  func.func @transform_10(%arg0: i32) -> (i32, i32) {
    %c0_i32 = arith.constant 0 : i32
    %c0_i32_0 = arith.constant 0 : i32
    return %c0_i32, %arg0 : i32, i32
  }
  func.func @transform_11(%arg0: i32) -> (i32, i32) {
    %c0_i32 = arith.constant 0 : i32
    %c0_i32_0 = arith.constant 0 : i32
    return %c0_i32, %arg0 : i32, i32
  }
  func.func @transform_12(%arg0: i32) -> (i32, i32) {
    %c0_i32 = arith.constant 0 : i32
    %c0_i32_0 = arith.constant 0 : i32
    %c0_i32_1 = arith.constant 0 : i32
    return %c0_i32, %c0_i32_0 : i32, i32
  }
  func.func @transform_13(%arg0: i32) -> (i32, i32) {
    %c0_i32 = arith.constant 0 : i32
    %c0_i32_0 = arith.constant 0 : i32
    %c0_i32_1 = arith.constant 0 : i32
    return %c0_i32, %c0_i32_0 : i32, i32
  }
  func.func @transform_14(%arg0: i32) -> (i32, i32) {
    %c0_i32 = arith.constant 0 : i32
    %c0_i32_0 = arith.constant 0 : i32
    %c0_i32_1 = arith.constant 0 : i32
    return %c0_i32, %c0_i32_0 : i32, i32
  }
  func.func @transform_15(%arg0: i32) -> (i32, i32) {
    %c0_i32 = arith.constant 0 : i32
    %c0_i32_0 = arith.constant 0 : i32
    %c0_i32_1 = arith.constant 0 : i32
    return %c0_i32, %c0_i32_0 : i32, i32
  }
}

</mosaic_0001>

<bundles_post_ra>
// kernel: tpu_custom_call.1
= control target key start
LH: loop header
LB: loop body
LE: loop exit
PB: predicated region body
PF: predicated region fallthrough
CT: control target
= control target key end

     0   :  { %21 = vsyncpa [#allocation4], 0  ;;  %s2808_s0 = inlined_call_operand.hbm [shape: bf16[8,128], index: 0, kind: input, shape index: {}]   ;;  %s2809_s1 = inlined_call_operand.hbm [shape: f32[8,128], index: 1, kind: input, shape index: {}]   ;;  %s2810_s2 = inlined_call_operand.hbm [shape: f32[8,128], index: 2, kind: input, shape index: {}]   ;;  %s2811_s3 = inlined_call_operand.hbm [shape: f32[8,128], index: 3, kind: input, shape index: {}]   ;;  %s2812_s4 = inlined_call_operand.hbm [shape: f32[8,128], index: 4, kind: input, shape index: {}]   ;;  %s2813_s5 = inlined_call_operand.hbm [shape: bf16[256,512], index: 5, kind: input, shape index: {}]   ;;  %s2814_s6 = inlined_call_operand.vmem [shape: f32[1,512], index: 6, kind: input, shape index: {}]   ;;  %s2815_s7 = inlined_call_operand.hbm [shape: bf16[256,512], index: 7, kind: input, shape index: {}]   ;;  %s2816_s8 = inlined_call_operand.hbm [shape: f32[1,512], index: 8, kind: input, shape index: {}]   ;;  %s2817_s9 = inlined_call_operand.hbm [shape: bf16[128,128], index: 9, kind: input, shape index: {}]   ;;  %s2818_s10 = inlined_call_operand.vmem [shape: f32[1,128], index: 10, kind: input, shape index: {}]   ;;  %s2819_s11 = inlined_call_operand.hbm [shape: f32[8,128], index: 11, kind: output, shape index: {0}]   ;;  %s2820_s12 = inlined_call_operand.hbm [shape: f32[8,128], index: 12, kind: output, shape index: {1}]   ;;  %s2821_s13 = inlined_call_operand.hbm [shape: f32[8,128], index: 13, kind: output, shape index: {2}]   ;;  %s2822_s14 = inlined_call_operand.hbm [shape: f32[8,128], index: 14, kind: output, shape index: {3}]   ;;  %s2823_s15 = inlined_call_operand.hbm [shape: f32[8,128], index: 15, kind: output, shape index: {4}]  }
   0x1   :  { %22 = vsyncpa [#allocation7], 0 }
   0x2   :  { %23 = vsyncpa [#allocation10], 0 }
   0x3   :  { %24 = vsyncpa [#allocation13], 0 }
   0x4   :  { %25 = vsyncpa [#allocation16], 0 }
   0x5   :  { %26 = vsyncpa [#allocation5], 0 }
   0x6   :  { %27 = vsyncpa [#allocation20], 0  ;;  %s45_s20 = sshll.u32 %s2809_s1, 4  ;;  %s46_s20 = int_to_ptr.hbm [resolvable:$true] %s45_s20 }
   0x7   :  { %28 = vsyncpa [#allocation23], 0  ;;  %s2569_s21 = smov [#allocation6]   ;;  %s67_s25 = sshll.u32 %s2811_s3, 4  ;;  %s68_s25 = int_to_ptr.hbm [resolvable:$true] %s67_s25 }
   0x8   :  { %s47_s22 = sshll.u32 %s2569_s21, 4  ;;  %s2570_s26 = smov [#allocation9]   ;;  %s48_s22 = int_to_ptr.vmem [resolvable:$true] %s47_s22 }
   0x9   :  { %50 = dma.hbm_to_vmem [thread:$0]  %s46_s20, 128, %s48_s22, [#allocation7]  }
   0xa   :  { %s69_s27 = sshll.u32 %s2570_s26, 4  ;;  %s88_s30 = sshll.u32 %s2813_s5, 4  ;;  %s70_s27 = int_to_ptr.vmem [resolvable:$true] %s69_s27  ;;  %s89_s30 = int_to_ptr.hbm [resolvable:$true] %s88_s30 }
   0xb   :  { %72 = dma.hbm_to_vmem [thread:$0]  %s68_s25, 128, %s70_s27, [#allocation10]  }
   0xc   :  { %s2571_s1 = smov [#allocation12]   ;;  %s117_s19 = sshll.u32 %s2816_s8, 4  ;;  %s118_s19 = int_to_ptr.hbm [resolvable:$true] %s117_s19 }
   0xd   :  { %s90_s16 = sshll.u32 %s2571_s1, 4  ;;  %s2572_s21 = smov 256   ;;  %s91_s16 = int_to_ptr.vmem [resolvable:$true] %s90_s16 }
   0xe   :  { %s2573_s3 = smov 16   ;;  %s2574_s20 = smov [#allocation15]  }
   0xf   :  { %96 = dma.hbm_to_vmem [thread:$0]  %s89_s30, 8192, %s91_s16, [#allocation13], %s2572_s21, %s2572_s21, %s2573_s3  }
  0x10   :  { %s119_s22 = sshll.u32 %s2574_s20, 4  ;;  %s34_s24 = sshll.u32 %s2808_s0, 4  ;;  %s120_s22 = int_to_ptr.vmem [resolvable:$true] %s119_s22  ;;  %s35_s24 = int_to_ptr.hbm [resolvable:$true] %s34_s24 }
  0x11   :  { %122 = dma.hbm_to_vmem [thread:$0]  %s118_s19, 64, %s120_s22, [#allocation16]  }
  0x12   :  { %s56_s8 = sshll.u32 %s2810_s2, 4  ;;  %s2575_s27 = smov [#allocation3]   ;;  %s57_s8 = int_to_ptr.hbm [resolvable:$true] %s56_s8 }
  0x13   :  { %s36_s28 = sshll.u32 %s2575_s27, 4  ;;  %s2576_s29 = smov [#allocation8]   ;;  %s37_s28 = int_to_ptr.vmem [resolvable:$true] %s36_s28 }
  0x14   :  { %39 = dma.hbm_to_vmem [thread:$0]  %s35_s24, 64, %s37_s28, [#allocation4]  }
  0x15   :  { %s58_s30 = sshll.u32 %s2576_s29, 4  ;;  %s78_s17 = sshll.u32 %s2812_s4, 4  ;;  %s59_s30 = int_to_ptr.vmem [resolvable:$true] %s58_s30  ;;  %s79_s17 = int_to_ptr.hbm [resolvable:$true] %s78_s17 }
  0x16   :  { %61 = dma.hbm_to_vmem [thread:$0]  %s57_s8, 128, %s59_s30, [#allocation7]  }
  0x17   :  { %s103_s19 = sshll.u32 %s2815_s7, 4  ;;  %s2577_s20 = smov [#allocation11]   ;;  %s104_s19 = int_to_ptr.hbm [resolvable:$true] %s103_s19 }
  0x18   :  { %s80_s2 = sshll.u32 %s2577_s20, 4  ;;  %s2578_s22 = smov [#allocation14]   ;;  %s81_s2 = int_to_ptr.vmem [resolvable:$true] %s80_s2 }
  0x19   :  { %83 = dma.hbm_to_vmem [thread:$0]  %s79_s17, 128, %s81_s2, [#allocation10]  }
  0x1a   :  { %s105_s5 = sshll.u32 %s2578_s22, 4  ;;  %s127_s25 = sshll.u32 %s2817_s9, 4  ;;  %s106_s5 = int_to_ptr.vmem [resolvable:$true] %s105_s5  ;;  %s128_s25 = int_to_ptr.hbm [resolvable:$true] %s127_s25 }
  0x1b   :  { %111 = dma.hbm_to_vmem [thread:$0]  %s104_s19, 8192, %s106_s5, [#allocation13], %s2572_s21, %s2572_s21, %s2573_s3  }
  0x1c   :  { %s2579_s4 = smov [#allocation17]   ;;  %s2580_s7 = smov 64  }
  0x1d   :  { %s129_s26 = sshll.u32 %s2579_s4, 4  ;;  %s2581_s8 = smov 4   ;;  %s130_s26 = int_to_ptr.vmem [resolvable:$true] %s129_s26 }
  0x1e   :  { %135 = dma.hbm_to_vmem [thread:$0]  %s128_s25, 1024, %s130_s26, [#allocation16], %s2580_s7, %s2580_s7, %s2581_s8  }
  0x1f   :  { %2553 = dma.done.wait [#allocation4], 64  }
  0x20   :  { %2554 = vsyncadd [#allocation4], 4294967232 }
  0x21   :  { %2555 = dma.done.wait [#allocation7], 256  }
  0x22   :  { %2556 = vsyncadd [#allocation7], 4294967040 }
  0x23   :  { %2557 = dma.done.wait [#allocation10], 256  }
  0x24   :  { %2558 = vsyncadd [#allocation10], 4294967040 }
  0x25   :  { %2559 = dma.done.wait [#allocation13], 16384  }
  0x26   :  { %2560 = vsyncadd [#allocation13], 4294950912 }
  0x27   :  { %2561 = dma.done.wait [#allocation16], 1088  }
  0x28   :  { %2562 = vsyncadd [#allocation16], 4294966208  ;;  %v1594_v0 = vld [vmem:[#allocation12 + $0xe0] sm:$0xf]  ;;  %v2060_v1 = vld [vmem:[#allocation12 + $0xec] sm:$0xf0] }
  0x29   :  { %v2058_v2 = vld [vmem:[#allocation12 + $0xe4] sm:$0xf]  ;;  %v1595_v3 = vor.u32 %v2060_v1, %v1594_v0  ;;  %v1596_v4 = vld [vmem:[#allocation12 + $0xf0] sm:$0xf0]  ;;  %v1722_v9 = vld [vmem:[#allocation12 + $0x1e0] sm:$0xf] }
  0x2a   :  { %v2090_v5 = vld [vmem:[#allocation12 + $0x1e4] sm:$0xf]  ;;  %v1724_v6 = vld [vmem:[#allocation12 + $0x1f0] sm:$0xf0]  ;;  %v1599_v7 = vor.u32 %v2058_v2, %v1596_v4  ;;  %v2092_v10 = vld [vmem:[#allocation12 + $0x1ec] sm:$0xf0] }
  0x2b   :  { %v1727_v8 = vor.u32 %v2090_v5, %v1724_v6  ;;  %v1578_v11 = vld [vmem:[#allocation12 + $0xc0] sm:$0xf]  ;;  %576 = vmatpush.bf16.msra.mxu0 %v1595_v3  ;;  %v1723_v12 = vor.u32 %v2092_v10, %v1722_v9  ;;  %v2056_v13 = vld [vmem:[#allocation12 + $0xcc] sm:$0xf0]  ;;  %v2054_v14 = vld [vmem:[#allocation12 + $0xc4] sm:$0xf] }
  0x2c   :  { %v1580_v15 = vld [vmem:[#allocation12 + $0xd0] sm:$0xf0]  ;;  %602 = vmatpush.bf16.msra.mxu2 %v1599_v7  ;;  %v1579_v16 = vor.u32 %v2056_v13, %v1578_v11  ;;  %v2086_v18 = vld [vmem:[#allocation12 + $0x1c4] sm:$0xf]  ;;  %v1706_v20 = vld [vmem:[#allocation12 + $0x1c0] sm:$0xf] }
  0x2d   :  { %615 = vmatpush.bf16.msra.mxu3 %v1727_v8  ;;  %v1583_v17 = vor.u32 %v2054_v14, %v1580_v15  ;;  %v1708_v19 = vld [vmem:[#allocation12 + $0x1d0] sm:$0xf0]  ;;  %589 = vmatpush.bf16.msra.mxu1 %v1723_v12  ;;  %v2088_v22 = vld [vmem:[#allocation12 + $0x1cc] sm:$0xf0]  ;;  %v1562_v23 = vld [vmem:[#allocation12 + $0xa0] sm:$0xf] }
  0x2e   :  { %v1711_v21 = vor.u32 %v2086_v18, %v1708_v19  ;;  %v2052_v24 = vld [vmem:[#allocation12 + $0xac] sm:$0xf0]  ;;  %v1707_v25 = vor.u32 %v2088_v22, %v1706_v20  ;;  %v2050_v26 = vld [vmem:[#allocation12 + $0xa4] sm:$0xf]  ;;  %v1564_v27 = vld [vmem:[#allocation12 + $0xb0] sm:$0xf0] }
  0x2f   :  { %v2082_v28 = vld [vmem:[#allocation12 + $0x1a4] sm:$0xf]  ;;  %577 = vmatpush.bf16.msra.mxu0 %v1579_v16  ;;  %v1563_v29 = vor.u32 %v2052_v24, %v1562_v23  ;;  %v1692_v30 = vld [vmem:[#allocation12 + $0x1b0] sm:$0xf0]  ;;  %v1690_v31 = vld [vmem:[#allocation12 + $0x1a0] sm:$0xf]  ;;  %v1567_v33 = vor.u32 %v2050_v26, %v1564_v27 }
  0x30   :  { %v2084_v32 = vld [vmem:[#allocation12 + $0x1ac] sm:$0xf0]  ;;  %603 = vmatpush.bf16.msra.mxu2 %v1583_v17  ;;  %v1695_v34 = vor.u32 %v2082_v28, %v1692_v30  ;;  %v1546_v35 = vld [vmem:[#allocation12 + $0x80] sm:$0xf]  ;;  %v2046_v37 = vld [vmem:[#allocation12 + $0x84] sm:$0xf] }
  0x31   :  { %616 = vmatpush.bf16.msra.mxu3 %v1711_v21  ;;  %v2048_v36 = vld [vmem:[#allocation12 + $0x8c] sm:$0xf0]  ;;  %590 = vmatpush.bf16.msra.mxu1 %v1707_v25  ;;  %v1691_v38 = vor.u32 %v2084_v32, %v1690_v31  ;;  %v1548_v39 = vld [vmem:[#allocation12 + $0x90] sm:$0xf0]  ;;  %v2078_v40 = vld [vmem:[#allocation12 + $0x184] sm:$0xf] }
  0x32   :  { %v1676_v41 = vld [vmem:[#allocation12 + $0x190] sm:$0xf0]  ;;  %v1674_v42 = vld [vmem:[#allocation12 + $0x180] sm:$0xf]  ;;  %v2080_v43 = vld [vmem:[#allocation12 + $0x18c] sm:$0xf0]  ;;  %v1547_v44 = vor.u32 %v2048_v36, %v1546_v35  ;;  %v1551_v45 = vor.u32 %v2046_v37, %v1548_v39 }
  0x33   :  { %578 = vmatpush.bf16.msra.mxu0 %v1563_v29  ;;  %v1679_v46 = vor.u32 %v2078_v40, %v1676_v41  ;;  %v1530_v47 = vld [vmem:[#allocation12 + $0x60] sm:$0xf]  ;;  %v2044_v48 = vld [vmem:[#allocation12 + $0x6c] sm:$0xf0]  ;;  %v2042_v49 = vld [vmem:[#allocation12 + $0x64] sm:$0xf]  ;;  %v1675_v50 = vor.u32 %v2080_v43, %v1674_v42 }
  0x34   :  { %604 = vmatpush.bf16.msra.mxu2 %v1567_v33  ;;  %v1532_v51 = vld [vmem:[#allocation12 + $0x70] sm:$0xf0]  ;;  %v2074_v52 = vld [vmem:[#allocation12 + $0x164] sm:$0xf]  ;;  %v1658_v54 = vld [vmem:[#allocation12 + $0x160] sm:$0xf]  ;;  %v1531_v56 = vor.u32 %v2044_v48, %v1530_v47 }
  0x35   :  { %617 = vmatpush.bf16.msra.mxu3 %v1695_v34  ;;  %591 = vmatpush.bf16.msra.mxu1 %v1691_v38  ;;  %v1660_v53 = vld [vmem:[#allocation12 + $0x170] sm:$0xf0]  ;;  %v2076_v55 = vld [vmem:[#allocation12 + $0x16c] sm:$0xf0]  ;;  %v1535_v57 = vor.u32 %v2042_v49, %v1532_v51  ;;  %v1514_v59 = vld [vmem:[#allocation12 + $0x40] sm:$0xf] }
  0x36   :  { %v1663_v58 = vor.u32 %v2074_v52, %v1660_v53  ;;  %v2040_v60 = vld [vmem:[#allocation12 + $0x4c] sm:$0xf0]  ;;  %v2038_v61 = vld [vmem:[#allocation12 + $0x44] sm:$0xf]  ;;  %v1659_v62 = vor.u32 %v2076_v55, %v1658_v54  ;;  %v1516_v63 = vld [vmem:[#allocation12 + $0x50] sm:$0xf0] }
  0x37   :  { %579 = vmatpush.bf16.msra.mxu0 %v1547_v44  ;;  %v2070_v0 = vld [vmem:[#allocation12 + $0x144] sm:$0xf]  ;;  %v1644_v1 = vld [vmem:[#allocation12 + $0x150] sm:$0xf0]  ;;  %v1642_v2 = vld [vmem:[#allocation12 + $0x140] sm:$0xf]  ;;  %v1515_v4 = vor.u32 %v2040_v60, %v1514_v59  ;;  %v1519_v5 = vor.u32 %v2038_v61, %v1516_v63 }
  0x38   :  { %605 = vmatpush.bf16.msra.mxu2 %v1551_v45  ;;  %v2072_v3 = vld [vmem:[#allocation12 + $0x14c] sm:$0xf0]  ;;  %v1647_v6 = vor.u32 %v2070_v0, %v1644_v1  ;;  %v1498_v7 = vld [vmem:[#allocation12 + $0x20] sm:$0xf]  ;;  %v2034_v9 = vld [vmem:[#allocation12 + $0x24] sm:$0xf] }
  0x39   :  { %618 = vmatpush.bf16.msra.mxu3 %v1679_v46  ;;  %592 = vmatpush.bf16.msra.mxu1 %v1675_v50  ;;  %v2036_v8 = vld [vmem:[#allocation12 + $0x2c] sm:$0xf0]  ;;  %v1643_v10 = vor.u32 %v2072_v3, %v1642_v2  ;;  %v1500_v11 = vld [vmem:[#allocation12 + $0x30] sm:$0xf0]  ;;  %v2066_v12 = vld [vmem:[#allocation12 + $0x124] sm:$0xf] }
  0x3a   :  { %v1628_v13 = vld [vmem:[#allocation12 + $0x130] sm:$0xf0]  ;;  %v1626_v14 = vld [vmem:[#allocation12 + $0x120] sm:$0xf]  ;;  %v2068_v15 = vld [vmem:[#allocation12 + $0x12c] sm:$0xf0]  ;;  %v1499_v16 = vor.u32 %v2036_v8, %v1498_v7  ;;  %v1503_v19 = vor.u32 %v2034_v9, %v1500_v11 }
  0x3b   :  { %580 = vmatpush.bf16.msra.mxu0 %v1531_v56  ;;  %v1482_v17 = vld [vmem:[#allocation12] sm:$0xf]  ;;  %v2032_v18 = vld [vmem:[#allocation12 + $0xc] sm:$0xf0]  ;;  %v1631_v20 = vor.u32 %v2066_v12, %v1628_v13  ;;  %v2030_v21 = vld [vmem:[#allocation12 + $0x4] sm:$0xf]  ;;  %v1627_v24 = vor.u32 %v2068_v15, %v1626_v14 }
  0x3c   :  { %606 = vmatpush.bf16.msra.mxu2 %v1535_v57  ;;  %v1484_v22 = vld [vmem:[#allocation12 + $0x10] sm:$0xf0]  ;;  %v2062_v23 = vld [vmem:[#allocation12 + $0x104] sm:$0xf]  ;;  %v1602_v26 = vld [vmem:[#allocation12 + $0xe8] sm:$0xf]  ;;  %v1483_v31 = vor.u32 %v2032_v18, %v1482_v17 }
  0x3d   :  { %619 = vmatpush.bf16.msra.mxu3 %v1663_v58  ;;  %593 = vmatpush.bf16.msra.mxu1 %v1659_v62  ;;  %v1612_v25 = vld [vmem:[#allocation12 + $0x110] sm:$0xf0]  ;;  %v2061_v27 = vld [vmem:[#allocation12 + $0xf4] sm:$0xf0]  ;;  %v2059_v28 = vld [vmem:[#allocation12 + $0xec] sm:$0xf]  ;;  %v1487_v35 = vor.u32 %v2030_v21, %v1484_v22 }
  0x3e   :  { %v1604_v29 = vld [vmem:[#allocation12 + $0xf8] sm:$0xf0]  ;;  %v2091_v30 = vld [vmem:[#allocation12 + $0x1ec] sm:$0xf]  ;;  %v1610_v33 = vld [vmem:[#allocation12 + $0x100] sm:$0xf]  ;;  %v1615_v36 = vor.u32 %v2062_v23, %v1612_v25  ;;  %v1603_v39 = vor.u32 %v2061_v27, %v1602_v26 }
  0x3f   :  { %581 = vmatpush.bf16.msra.mxu0 %v1515_v4  ;;  %v1732_v32 = vld [vmem:[#allocation12 + $0x1f8] sm:$0xf0]  ;;  %v2064_v34 = vld [vmem:[#allocation12 + $0x10c] sm:$0xf0]  ;;  %v1730_v37 = vld [vmem:[#allocation12 + $0x1e8] sm:$0xf]  ;;  %v1607_v40 = vor.u32 %v2059_v28, %v1604_v29 }
  0x40   :  { %607 = vmatpush.bf16.msra.mxu2 %v1519_v5  ;;  %v2093_v38 = vld [vmem:[#allocation12 + $0x1f4] sm:$0xf0]  ;;  %v179_v41 = vld [vmem:[#allocation6] sm:$0xff]  ;;  %v1586_v42 = vld [vmem:[#allocation12 + $0xc8] sm:$0xf]  ;;  %v1735_v43 = vor.u32 %v2091_v30, %v1732_v32  ;;  %v1611_v44 = vor.u32 %v2064_v34, %v1610_v33  ;;  %s1415_s27 = sshll.u32 %s2820_s12, 4  ;;  %s1416_s27 = int_to_ptr.hbm [resolvable:$true] %s1415_s27 }
  0x41   :  { %620 = vmatpush.bf16.msra.mxu3 %v1647_v6  ;;  %594 = vmatpush.bf16.msra.mxu1 %v1643_v10  ;;  %v2057_v45 = vld [vmem:[#allocation12 + $0xd4] sm:$0xf0]  ;;  %v2055_v46 = vld [vmem:[#allocation12 + $0xcc] sm:$0xf]  ;;  %v1588_v47 = vld [vmem:[#allocation12 + $0xd8] sm:$0xf0]  ;;  %v1731_v48 = vor.u32 %v2093_v38, %v1730_v37  ;;  %v2702_v52 = vpack.c.bf16 %v179_v41, %v179_v41 }
  0x42   :  { %v2087_v49 = vld [vmem:[#allocation12 + $0x1cc] sm:$0xf]  ;;  %v1716_v50 = vld [vmem:[#allocation12 + $0x1d8] sm:$0xf0]  ;;  %v1714_v53 = vld [vmem:[#allocation12 + $0x1c8] sm:$0xf]  ;;  %v1587_v55 = vor.u32 %v2057_v45, %v1586_v42  ;;  %v1591_v56 = vor.u32 %v2055_v46, %v1588_v47 }
  0x43   :  { %582 = vmatpush.bf16.msra.mxu0 %v1499_v16  ;;  %v2700_v51 = vld [vmem:[#allocation3] sm:$0xf]  ;;  %v2089_v54 = vld [vmem:[#allocation12 + $0x1d4] sm:$0xf0]  ;;  %v1570_v57 = vld [vmem:[#allocation12 + $0xa8] sm:$0xf]  ;;  %v1719_v58 = vor.u32 %v2087_v49, %v1716_v50 }
  0x44   :  { %608 = vmatpush.bf16.msra.mxu2 %v1503_v19  ;;  %v2053_v59 = vld [vmem:[#allocation12 + $0xb4] sm:$0xf0]  ;;  %v2051_v60 = vld [vmem:[#allocation12 + $0xac] sm:$0xf]  ;;  %v1572_v61 = vld [vmem:[#allocation12 + $0xb8] sm:$0xf0]  ;;  %v1715_v62 = vor.u32 %v2089_v54, %v1714_v53 }
  0x45   :  { %621 = vmatpush.bf16.msra.mxu3 %v1631_v20  ;;  %595 = vmatpush.bf16.msra.mxu1 %v1627_v24  ;;  %v2083_v63 = vld [vmem:[#allocation12 + $0x1ac] sm:$0xf]  ;;  %v1700_v0 = vld [vmem:[#allocation12 + $0x1b8] sm:$0xf0]  ;;  %v1698_v1 = vld [vmem:[#allocation12 + $0x1a8] sm:$0xf]  ;;  %v1571_v3 = vor.u32 %v2053_v59, %v1570_v57  ;;  %v1575_v4 = vor.u32 %v2051_v60, %v1572_v61 }
  0x46   :  { %v2085_v2 = vld [vmem:[#allocation12 + $0x1b4] sm:$0xf0]  ;;  %v1554_v5 = vld [vmem:[#allocation12 + $0x88] sm:$0xf]  ;;  %v1703_v6 = vor.u32 %v2083_v63, %v1700_v0  ;;  %v2047_v8 = vld [vmem:[#allocation12 + $0x8c] sm:$0xf] }
  0x47   :  { %583 = vmatpush.bf16.msra.mxu0 %v1483_v31  ;;  %v2049_v7 = vld [vmem:[#allocation12 + $0x94] sm:$0xf0]  ;;  %v1556_v9 = vld [vmem:[#allocation12 + $0x98] sm:$0xf0]  ;;  %v1699_v10 = vor.u32 %v2085_v2, %v1698_v1  ;;  %v2079_v11 = vld [vmem:[#allocation12 + $0x18c] sm:$0xf] }
  0x48   :  { %609 = vmatpush.bf16.msra.mxu2 %v1487_v35  ;;  %v1684_v12 = vld [vmem:[#allocation12 + $0x198] sm:$0xf0]  ;;  %v1682_v13 = vld [vmem:[#allocation12 + $0x188] sm:$0xf]  ;;  %v2081_v14 = vld [vmem:[#allocation12 + $0x194] sm:$0xf0]  ;;  %v1555_v15 = vor.u32 %v2049_v7, %v1554_v5  ;;  %v1559_v16 = vor.u32 %v2047_v8, %v1556_v9 }
  0x49   :  { %622 = vmatpush.bf16.msra.mxu3 %v1615_v36  ;;  %596 = vmatpush.bf16.msra.mxu1 %v1611_v44  ;;  %v1538_v17 = vld [vmem:[#allocation12 + $0x68] sm:$0xf]  ;;  %v1687_v18 = vor.u32 %v2079_v11, %v1684_v12  ;;  %v2045_v19 = vld [vmem:[#allocation12 + $0x74] sm:$0xf0]  ;;  %v2043_v20 = vld [vmem:[#allocation12 + $0x6c] sm:$0xf]  ;;  %v1683_v22 = vor.u32 %v2081_v14, %v1682_v13 }
  0x4a   :  { %584 = vmatmul.bf16.vlgmr.msra.gmra.mxu0 %v2700_v51  ;;  %v1540_v21 = vld [vmem:[#allocation12 + $0x78] sm:$0xf0]  ;;  %v2075_v23 = vld [vmem:[#allocation12 + $0x16c] sm:$0xf]  ;;  %v1666_v25 = vld [vmem:[#allocation12 + $0x168] sm:$0xf]  ;;  %v1539_v27 = vor.u32 %v2045_v19, %v1538_v17 }
  0x4b   :  { %628 = vmatpush.bf16.msrb.mxu0 %v1603_v39  ;;  %610 = vmatmul.bf16.vlgmr.msra.gmra.mxu2 %v2700_v51  ;;  %v1668_v24 = vld [vmem:[#allocation12 + $0x178] sm:$0xf0]  ;;  %v2077_v26 = vld [vmem:[#allocation12 + $0x174] sm:$0xf0]  ;;  %v1543_v28 = vor.u32 %v2043_v20, %v1540_v21  ;;  %v1522_v29 = vld [vmem:[#allocation12 + $0x48] sm:$0xf] }
  0x4c   :  { %654 = vmatpush.bf16.msrb.mxu2 %v1607_v40  ;;  %623 = vmatmul.bf16.vlgmr.msra.gmra.mxu3 %v2702_v52  ;;  %v1671_v30 = vor.u32 %v2075_v23, %v1668_v24  ;;  %v2041_v31 = vld [vmem:[#allocation12 + $0x54] sm:$0xf0]  ;;  %v2039_v32 = vld [vmem:[#allocation12 + $0x4c] sm:$0xf]  ;;  %v1524_v33 = vld [vmem:[#allocation12 + $0x58] sm:$0xf0]  ;;  %v1667_v34 = vor.u32 %v2077_v26, %v1666_v25 }
  0x4d   :  { %667 = vmatpush.bf16.msrb.mxu3 %v1735_v43  ;;  %641 = vmatpush.bf16.msrb.mxu1 %v1731_v48  ;;  %v2071_v35 = vld [vmem:[#allocation12 + $0x14c] sm:$0xf]  ;;  %v1652_v36 = vld [vmem:[#allocation12 + $0x158] sm:$0xf0]  ;;  %v1650_v37 = vld [vmem:[#allocation12 + $0x148] sm:$0xf]  ;;  %v1523_v39 = vor.u32 %v2041_v31, %v1522_v29  ;;  %v1527_v40 = vor.u32 %v2039_v32, %v1524_v33 }
  0x4e   :  { %597 = vmatmul.bf16.vlgmr.msra.gmra.mxu1 %v2702_v52  ;;  %v2073_v38 = vld [vmem:[#allocation12 + $0x154] sm:$0xf0]  ;;  %v1506_v41 = vld [vmem:[#allocation12 + $0x28] sm:$0xf]  ;;  %v1655_v42 = vor.u32 %v2071_v35, %v1652_v36  ;;  %v2035_v44 = vld [vmem:[#allocation12 + $0x2c] sm:$0xf] }
  0x4f   :  { %629 = vmatpush.bf16.msrb.mxu0 %v1587_v55  ;;  %v2037_v43 = vld [vmem:[#allocation12 + $0x34] sm:$0xf0]  ;;  %v1508_v45 = vld [vmem:[#allocation12 + $0x38] sm:$0xf0]  ;;  %v1651_v46 = vor.u32 %v2073_v38, %v1650_v37  ;;  %v2067_v47 = vld [vmem:[#allocation12 + $0x12c] sm:$0xf] }
  0x50   :  { %655 = vmatpush.bf16.msrb.mxu2 %v1591_v56  ;;  %v1636_v48 = vld [vmem:[#allocation12 + $0x138] sm:$0xf0]  ;;  %v1634_v49 = vld [vmem:[#allocation12 + $0x128] sm:$0xf]  ;;  %v2069_v50 = vld [vmem:[#allocation12 + $0x134] sm:$0xf0]  ;;  %v1507_v53 = vor.u32 %v2037_v43, %v1506_v41  ;;  %v1511_v54 = vor.u32 %v2035_v44, %v1508_v45 }
  0x51   :  { %668 = vmatpush.bf16.msrb.mxu3 %v1719_v58  ;;  %642 = vmatpush.bf16.msrb.mxu1 %v1715_v62  ;;  %v1490_v55 = vld [vmem:[#allocation12 + $0x8] sm:$0xf]  ;;  %v1639_v56 = vor.u32 %v2067_v47, %v1636_v48  ;;  %v2033_v57 = vld [vmem:[#allocation12 + $0x14] sm:$0xf0]  ;;  %v2031_v58 = vld [vmem:[#allocation12 + $0xc] sm:$0xf]  ;;  %v1635_v60 = vor.u32 %v2069_v50, %v1634_v49 }
  0x52   :  { %v1492_v59 = vld [vmem:[#allocation12 + $0x18] sm:$0xf0]  ;;  %v2063_v61 = vld [vmem:[#allocation12 + $0x10c] sm:$0xf]  ;;  %v1618_v63 = vld [vmem:[#allocation12 + $0x108] sm:$0xf]  ;;  %v1491_v1 = vor.u32 %v2033_v57, %v1490_v55 }
  0x53   :  { %630 = vmatpush.bf16.msrb.mxu0 %v1571_v3  ;;  %v1620_v62 = vld [vmem:[#allocation12 + $0x118] sm:$0xf0]  ;;  %v2065_v0 = vld [vmem:[#allocation12 + $0x114] sm:$0xf0]  ;;  %v1495_v2 = vor.u32 %v2031_v58, %v1492_v59  ;;  %v2154_v5 = vld [vmem:[#allocation14 + $0x1e4] sm:$0xf] }
  0x54   :  { %656 = vmatpush.bf16.msrb.mxu2 %v1575_v4  ;;  %v1623_v3 = vor.u32 %v2063_v61, %v1620_v62  ;;  %v1619_v4 = vor.u32 %v2065_v0, %v1618_v63  ;;  %v2150_v8 = vld [vmem:[#allocation14 + $0x1c4] sm:$0xf]  ;;  %v1967_v9 = vld [vmem:[#allocation14 + $0x1d0] sm:$0xf0]  ;;  %v1853_v11 = vld [vmem:[#allocation14 + $0xe0] sm:$0xf] }
  0x55   :  { %669 = vmatpush.bf16.msrb.mxu3 %v1703_v6  ;;  %643 = vmatpush.bf16.msrb.mxu1 %v1699_v10  ;;  %v1983_v6 = vld [vmem:[#allocation14 + $0x1f0] sm:$0xf0]  ;;  %v1970_v10 = vor.u32 %v2150_v8, %v1967_v9  ;;  %v2124_v12 = vld [vmem:[#allocation14 + $0xec] sm:$0xf0]  ;;  %v2122_v13 = vld [vmem:[#allocation14 + $0xe4] sm:$0xf] }
  0x56   :  { %v1986_v7 = vor.u32 %v2154_v5, %v1983_v6  ;;  %v2715_v14 = vld [vmem:[%s2814_s6] sm:$0xf]  ;;  %v2156_v17 = vld [vmem:[#allocation14 + $0x1ec] sm:$0xf0]  ;;  %v1951_v21 = vld [vmem:[#allocation14 + $0x1b0] sm:$0xf0] }
  0x57   :  { %631 = vmatpush.bf16.msrb.mxu0 %v1555_v15  ;;  %v1855_v15 = vld [vmem:[#allocation14 + $0xf0] sm:$0xf0]  ;;  %v248_v19 = vperm.slane %v2715_v14, 0  ;;  %v1837_v23 = vld [vmem:[#allocation14 + $0xc0] sm:$0xf]  ;;  %s2582_s28 = smov [#allocation19]  }
  0x58   :  { %657 = vmatpush.bf16.msrb.mxu2 %v1559_v16  ;;  %v1858_v16 = vor.u32 %v2122_v13, %v1855_v15  ;;  %v2120_v24 = vld [vmem:[#allocation14 + $0xcc] sm:$0xf0]  ;;  %v2118_v25 = vld [vmem:[#allocation14 + $0xc4] sm:$0xf]  ;;  %v1965_v29 = vld [vmem:[#allocation14 + $0x1c0] sm:$0xf] }
  0x59   :  { %670 = vmatpush.bf16.msrb.mxu3 %v1687_v18  ;;  %644 = vmatpush.bf16.msrb.mxu1 %v1683_v22  ;;  %v2146_v18 = vld [vmem:[#allocation14 + $0x1a4] sm:$0xf]  ;;  %v1838_v26 = vor.u32 %v2120_v24, %v1837_v23  ;;  %v1821_v37 = vld [vmem:[#allocation14 + $0xa0] sm:$0xf]  ;;  %v2116_v38 = vld [vmem:[#allocation14 + $0xac] sm:$0xf0] }
  0x5a   :  { %v1954_v22 = vor.u32 %v2146_v18, %v1951_v21  ;;  %v2142_v31 = vld [vmem:[#allocation14 + $0x184] sm:$0xf]  ;;  %v1823_v43 = vld [vmem:[#allocation14 + $0xb0] sm:$0xf0]  ;;  %v2148_v47 = vld [vmem:[#allocation14 + $0x1ac] sm:$0xf0] }
  0x5b   :  { %632 = vmatpush.bf16.msrb.mxu0 %v1539_v27  ;;  %v1839_v27 = vld [vmem:[#allocation14 + $0xd0] sm:$0xf0]  ;;  %v2138_v48 = vld [vmem:[#allocation14 + $0x164] sm:$0xf]  ;;  %v2112_v57 = vld [vmem:[#allocation14 + $0x8c] sm:$0xf0] }
  0x5c   :  { %658 = vmatpush.bf16.msrb.mxu2 %v1543_v28  ;;  %v1842_v28 = vor.u32 %v2118_v25, %v1839_v27  ;;  %v1919_v50 = vld [vmem:[#allocation14 + $0x170] sm:$0xf0]  ;;  %v2110_v61 = vld [vmem:[#allocation14 + $0x84] sm:$0xf]  ;;  %v1933_v0 = vld [vmem:[#allocation14 + $0x180] sm:$0xf] }
  0x5d   :  { %671 = vmatpush.bf16.msrb.mxu3 %v1671_v30  ;;  %645 = vmatpush.bf16.msrb.mxu1 %v1667_v34  ;;  %v2152_v30 = vld [vmem:[#allocation14 + $0x1cc] sm:$0xf0]  ;;  %v1935_v34 = vld [vmem:[#allocation14 + $0x190] sm:$0xf0]  ;;  %v1922_v55 = vor.u32 %v2138_v48, %v1919_v50  ;;  %v1789_v8 = vld [vmem:[#allocation14 + $0x60] sm:$0xf] }
  0x5e   :  { %v1966_v33 = vor.u32 %v2152_v30, %v1965_v29  ;;  %v1938_v36 = vor.u32 %v2142_v31, %v1935_v34  ;;  %v1807_v62 = vld [vmem:[#allocation14 + $0x90] sm:$0xf0]  ;;  %v2108_v9 = vld [vmem:[#allocation14 + $0x6c] sm:$0xf0]  ;;  %v1773_v23 = vld [vmem:[#allocation14 + $0x40] sm:$0xf] }
  0x5f   :  { %633 = vmatpush.bf16.msrb.mxu0 %v1523_v39  ;;  %v2114_v39 = vld [vmem:[#allocation14 + $0xa4] sm:$0xf]  ;;  %v1810_v63 = vor.u32 %v2110_v61, %v1807_v62  ;;  %v1903_v6 = vld [vmem:[#allocation14 + $0x150] sm:$0xf0]  ;;  %v1790_v13 = vor.u32 %v2108_v9, %v1789_v8  ;;  %v2104_v24 = vld [vmem:[#allocation14 + $0x4c] sm:$0xf0] }
  0x60   :  { %659 = vmatpush.bf16.msrb.mxu2 %v1527_v40  ;;  %v249_v40 = vperm.slane %v2715_v14, 1  ;;  %v1826_v45 = vor.u32 %v2114_v39, %v1823_v43  ;;  %v2102_v25 = vld [vmem:[#allocation14 + $0x44] sm:$0xf]  ;;  %v1775_v29 = vld [vmem:[#allocation14 + $0x50] sm:$0xf0]  ;;  %s1413_s29 = sshll.u32 %s2582_s28, 4  ;;  %s1414_s29 = int_to_ptr.vmem [resolvable:$true] %s1413_s29 }
  0x61   :  { %672 = vmatpush.bf16.msrb.mxu3 %v1655_v42  ;;  %646 = vmatpush.bf16.msrb.mxu1 %v1651_v46  ;;  %v1822_v42 = vor.u32 %v2116_v38, %v1821_v37  ;;  %v1949_v46 = vld [vmem:[#allocation14 + $0x1a0] sm:$0xf]  ;;  %v1778_v30 = vor.u32 %v2102_v25, %v1775_v29  ;;  %v1871_v34 = vld [vmem:[#allocation14 + $0x110] sm:$0xf0]  ;;  %v2155_v37 = vld [vmem:[#allocation14 + $0x1ec] sm:$0xf] }
  0x62   :  { %v1950_v49 = vor.u32 %v2148_v47, %v1949_v46  ;;  %v1901_v31 = vld [vmem:[#allocation14 + $0x140] sm:$0xf]  ;;  %v1991_v38 = vld [vmem:[#allocation14 + $0x1f8] sm:$0xf0]  ;;  %v2098_v43 = vld [vmem:[#allocation14 + $0x24] sm:$0xf] }
  0x63   :  { %634 = vmatpush.bf16.msrb.mxu0 %v1507_v53  ;;  %v1757_v39 = vld [vmem:[#allocation14 + $0x20] sm:$0xf]  ;;  %v1759_v47 = vld [vmem:[#allocation14 + $0x30] sm:$0xf0]  ;;  %v2132_v50 = vld [vmem:[#allocation14 + $0x12c] sm:$0xf0] }
  0x64   :  { %660 = vmatpush.bf16.msrb.mxu2 %v1511_v54  ;;  %v1885_v48 = vld [vmem:[#allocation14 + $0x120] sm:$0xf]  ;;  %v2096_v61 = vld [vmem:[#allocation14 + $0xc] sm:$0xf0]  ;;  %v2094_v62 = vld [vmem:[#allocation14 + $0x4] sm:$0xf] }
  0x65   :  { %673 = vmatpush.bf16.msrb.mxu3 %v1639_v56  ;;  %647 = vmatpush.bf16.msrb.mxu1 %v1635_v60  ;;  %v1805_v56 = vld [vmem:[#allocation14 + $0x80] sm:$0xf]  ;;  %v2123_v9 = vld [vmem:[#allocation14 + $0xec] sm:$0xf]  ;;  %v1845_v25 = vld [vmem:[#allocation14 + $0xc8] sm:$0xf] }
  0x66   :  { %v1806_v60 = vor.u32 %v2112_v57, %v1805_v56  ;;  %v1741_v57 = vld [vmem:[#allocation14] sm:$0xf]  ;;  %s2583_s30 = smov [#allocation22]   ;;  %s1437_s0 = sshll.u32 %s2822_s14, 4  ;;  %s1438_s0 = int_to_ptr.hbm [resolvable:$true] %s1437_s0 }
  0x67   :  { %635 = vmatpush.bf16.msrb.mxu0 %v1491_v1  ;;  %v2144_v1 = vld [vmem:[#allocation14 + $0x18c] sm:$0xf0]  ;;  %s1435_s1 = sshll.u32 %s2583_s30, 4  ;;  %s2584_s18 = smov [#allocation21]   ;;  %s1436_s1 = int_to_ptr.vmem [resolvable:$true] %s1435_s1 }
  0x68   :  { %661 = vmatpush.bf16.msrb.mxu2 %v1495_v2  ;;  %v2134_v2 = vld [vmem:[#allocation14 + $0x144] sm:$0xf]  ;;  %v1934_v5 = vor.u32 %v2144_v1, %v1933_v0  ;;  %s1424_s19 = sshll.u32 %s2584_s18, 4  ;;  %s1426_s12 = sshll.u32 %s2821_s13, 4  ;;  %s1425_s19 = int_to_ptr.vmem [resolvable:$true] %s1424_s19  ;;  %s1427_s12 = int_to_ptr.hbm [resolvable:$true] %s1426_s12 }
  0x69   :  { %674 = vmatpush.bf16.msrb.mxu3 %v1623_v3  ;;  %648 = vmatpush.bf16.msrb.mxu1 %v1619_v4  ;;  %s1448_s23 = sshll.u32 %s2823_s15, 4  ;;  %s2585_s24 = smov [#allocation24]   ;;  %s1449_s23 = int_to_ptr.hbm [resolvable:$true] %s1448_s23 }
  0x6a   :  { %636 = vmatmul.bf16.vlgmr.msrb.gmra.mxu0 %v2700_v51  ;;  %s1446_s25 = sshll.u32 %s2585_s24, 4  ;;  %s2586_s26 = smov [#allocation18]   ;;  %s1447_s25 = int_to_ptr.vmem [resolvable:$true] %s1446_s25 }
  0x6b   :  { %662 = vmatmul.bf16.vlgmr.msrb.gmra.mxu2 %v2700_v51  ;;  %v1854_v51 = vor.u32 %v2124_v12, %v1853_v11  ;;  %s1402_s7 = sshll.u32 %s2586_s26, 4  ;;  %s1404_s9 = sshll.u32 %s2819_s11, 4  ;;  %s1403_s7 = int_to_ptr.vmem [resolvable:$true] %s1402_s7  ;;  %s1405_s9 = int_to_ptr.hbm [resolvable:$true] %s1404_s9 }
  0x6c   :  { %675 = vmatmul.bf16.vlgmr.msrb.gmra.mxu3 %v2702_v52  ;;  %649 = vmatmul.bf16.vlgmr.msrb.gmra.mxu1 %v2702_v52  ;;  %v1981_v52 = vld [vmem:[#allocation14 + $0x1e0] sm:$0xf] }
  0x6d   :  { %1180 = vmatpush.bf16.msra.mxu3 %v1986_v7  ;;  %1141 = vmatpush.bf16.msra.mxu0 %v1854_v51  ;;  %v1982_v20 = vor.u32 %v2156_v17, %v1981_v52  ;;  %v1906_v7 = vor.u32 %v2134_v2, %v1903_v6  ;;  %v1791_v51 = vld [vmem:[#allocation14 + $0x70] sm:$0xf0]  ;;  %v2140_v52 = vld [vmem:[#allocation14 + $0x16c] sm:$0xf0]  ;;  %v2130_v17 = vld [vmem:[#allocation14 + $0x124] sm:$0xf]  ;;  %v1742_v6 = vor.u32 %v2096_v61, %v1741_v57 }
  0x6e   :  { %1167 = vmatpush.bf16.msra.mxu2 %v1858_v16  ;;  %v1917_v16 = vld [vmem:[#allocation14 + $0x160] sm:$0xf]  ;;  %v251_v2 = vperm.slane %v2715_v14, 3  ;;  %v2139_v61 = vld [vmem:[#allocation14 + $0x16c] sm:$0xf] }
  0x6f   :  { %1154 = vmatpush.bf16.msra.mxu1 %v1982_v20  ;;  %v1918_v18 = vor.u32 %v2140_v52, %v1917_v16  ;;  %v2128_v16 = vld [vmem:[#allocation14 + $0x10c] sm:$0xf0]  ;;  %v1925_v52 = vld [vmem:[#allocation14 + $0x168] sm:$0xf] }
  0x71   :  { %1181 = vmatpush.bf16.msra.mxu3 %v1970_v10  ;;  %1142 = vmatpush.bf16.msra.mxu0 %v1838_v26  ;;  %v2106_v10 = vld [vmem:[#allocation14 + $0x64] sm:$0xf] }
  0x72   :  { %1168 = vmatpush.bf16.msra.mxu2 %v1842_v28  ;;  %v1794_v15 = vor.u32 %v2106_v10, %v1791_v51  ;;  %v1774_v28 = vor.u32 %v2104_v24, %v1773_v23  ;;  %v1863_v10 = vld [vmem:[#allocation14 + $0xf8] sm:$0xf0] }
  0x73   :  { %1155 = vmatpush.bf16.msra.mxu1 %v1966_v33  ;;  %v2126_v33 = vld [vmem:[#allocation14 + $0x104] sm:$0xf]  ;;  %v1866_v51 = vor.u32 %v2123_v9, %v1863_v10  ;;  %v1959_v24 = vld [vmem:[#allocation14 + $0x1b8] sm:$0xf0]  ;;  %v2111_v9 = vld [vmem:[#allocation14 + $0x8c] sm:$0xf] }
  0x74   :  { %v1815_v10 = vld [vmem:[#allocation14 + $0x98] sm:$0xf0] }
  0x75   :  { %1182 = vmatpush.bf16.msra.mxu3 %v1954_v22  ;;  %1143 = vmatpush.bf16.msra.mxu0 %v1822_v42  ;;  %v2100_v42 = vld [vmem:[#allocation14 + $0x2c] sm:$0xf0] }
  0x76   :  { %1169 = vmatpush.bf16.msra.mxu2 %v1826_v45  ;;  %v1758_v46 = vor.u32 %v2100_v42, %v1757_v39  ;;  %v2153_v39 = vld [vmem:[#allocation14 + $0x1d4] sm:$0xf0] }
  0x77   :  { %1156 = vmatpush.bf16.msra.mxu1 %v1950_v49  ;;  %v1762_v49 = vor.u32 %v2098_v43, %v1759_v47  ;;  %v744_v47 = vld [vmem:[#allocation9] sm:$0xff] }
  0x79   :  { %1183 = vmatpush.bf16.msra.mxu3 %v1938_v36  ;;  %1144 = vmatpush.bf16.msra.mxu0 %v1806_v60  ;;  %v1874_v36 = vor.u32 %v2126_v33, %v1871_v34  ;;  %v1973_v33 = vld [vmem:[#allocation14 + $0x1c8] sm:$0xf]  ;;  %v2141_v34 = vld [vmem:[#allocation14 + $0x174] sm:$0xf0] }
  0x7a   :  { %1170 = vmatpush.bf16.msra.mxu2 %v1810_v63  ;;  %v1743_v63 = vld [vmem:[#allocation14 + $0x10] sm:$0xf0] }
  0x7b   :  { %1157 = vmatpush.bf16.msra.mxu1 %v1934_v5 }
  0x7d   :  { %1184 = vmatpush.bf16.msra.mxu3 %v1922_v55  ;;  %1145 = vmatpush.bf16.msra.mxu0 %v1790_v13  ;;  %v250_v55 = vperm.slane %v2715_v14, 2  ;;  %v1911_v13 = vld [vmem:[#allocation14 + $0x158] sm:$0xf0] }
  0x7e   :  { %1171 = vmatpush.bf16.msra.mxu2 %v1794_v15  ;;  %v1869_v15 = vld [vmem:[#allocation14 + $0x100] sm:$0xf] }
  0x7f   :  { %1158 = vmatpush.bf16.msra.mxu1 %v1918_v18  ;;  %v1989_v18 = vld [vmem:[#allocation14 + $0x1e8] sm:$0xf] }
  0x81   :  { %1185 = vmatpush.bf16.msra.mxu3 %v1906_v7  ;;  %1146 = vmatpush.bf16.msra.mxu0 %v1774_v28  ;;  %v1746_v7 = vor.u32 %v2094_v62, %v1743_v63  ;;  %v2770_v62 = vpack.c.bf16 %v744_v47, %v744_v47 }
  0x82   :  { %1172 = vmatpush.bf16.msra.mxu2 %v1778_v30 }
  0x85   :  { %1147 = vmatpush.bf16.msra.mxu0 %v1758_v46  ;;  %v1829_v46 = vld [vmem:[#allocation14 + $0xa8] sm:$0xf] }
  0x86   :  { %1173 = vmatpush.bf16.msra.mxu2 %v1762_v49 }
  0x89   :  { %1148 = vmatpush.bf16.msra.mxu0 %v1742_v6 }
  0x8a   :  { %1174 = vmatpush.bf16.msra.mxu2 %v1746_v7 }
  0x8e   :  { %1219 = vmatpush.bf16.msrb.mxu2 %v1866_v51 }
  0xc7   :  { %v585_v32 = vpop.f32.mrf.mxu0 }
  0xc8   :  { %v586_v35 = vadd.f32 %v585_v32, %v248_v19  ;;  %v1887_v19 = vld [vmem:[#allocation14 + $0x130] sm:$0xf0]  ;;  %v2136_v32 = vld [vmem:[#allocation14 + $0x14c] sm:$0xf0] }
  0xc9   :  { %v1890_v22 = vor.u32 %v2130_v17, %v1887_v19  ;;  %v1870_v17 = vor.u32 %v2128_v16, %v1869_v15  ;;  %v2157_v19 = vld [vmem:[#allocation14 + $0x1f4] sm:$0xf0]  ;;  %v1818_v16 = vor.u32 %v2111_v9, %v1815_v10  ;;  %v1751_v9 = vld [vmem:[#allocation14 + $0x18] sm:$0xf0] }
  0xca   :  { %v1990_v23 = vor.u32 %v2157_v19, %v1989_v18  ;;  %v2135_v18 = vld [vmem:[#allocation14 + $0x14c] sm:$0xf] }
  0xcb   :  { %v598_v41 = vpop.f32.mrf.mxu1  ;;  %1186 = vmatpush.bf16.msra.mxu3 %v1890_v22 }
  0xcc   :  { %v599_v44 = vadd.f32 %v598_v41, %v586_v35  ;;  %v1902_v35 = vor.u32 %v2136_v32, %v1901_v31  ;;  %v1994_v41 = vor.u32 %v2155_v37, %v1991_v38  ;;  %v2119_v31 = vld [vmem:[#allocation14 + $0xcc] sm:$0xf]  ;;  %v1847_v32 = vld [vmem:[#allocation14 + $0xd8] sm:$0xf0]  ;;  %v1926_v37 = vor.u32 %v2141_v34, %v1925_v52 }
  0xcd   :  { %v1850_v38 = vor.u32 %v2119_v31, %v1847_v32  ;;  %v1799_v31 = vld [vmem:[#allocation14 + $0x78] sm:$0xf0] }
  0xce   :  { %v611_v53 = vpop.f32.mrf.mxu2  ;;  %v1736_v54 = vmul.f32 -1.442695, %v599_v44  ;;  %1159 = vmatpush.bf16.msra.mxu1 %v1902_v35 }
  0xcf   :  { %v612_v58 = vadd.f32 %v611_v53, %v249_v40  ;;  %v624_v59 = vpop.f32.mrf.mxu3  ;;  %v587_v4 = vpop.f32.mrf.mxu0  ;;  %1187 = vmatpush.bf16.msra.mxu3 %v1874_v36  ;;  %v2151_v53 = vld [vmem:[#allocation14 + $0x1cc] sm:$0xf]  ;;  %1220 = vmatpush.bf16.msrb.mxu2 %v1850_v38  ;;  %v1781_v38 = vld [vmem:[#allocation14 + $0x48] sm:$0xf] }
  0xd0   :  { %2185 = vpow2.f32 %v1736_v54  ;;  %v1975_v54 = vld [vmem:[#allocation14 + $0x1d8] sm:$0xf0]  ;;  %v2125_v4 = vld [vmem:[#allocation14 + $0xf4] sm:$0xf0] }
  0xd1   :  { %v625_v3 = vadd.f32 %v624_v59, %v612_v58  ;;  %v1886_v59 = vor.u32 %v2132_v50, %v1885_v48  ;;  %v1978_v60 = vor.u32 %v2151_v53, %v1975_v54  ;;  %v2117_v50 = vld [vmem:[#allocation14 + $0xb4] sm:$0xf0]  ;;  %v2115_v53 = vld [vmem:[#allocation14 + $0xac] sm:$0xf]  ;;  %v1831_v54 = vld [vmem:[#allocation14 + $0xb8] sm:$0xf0] }
  0xd2   :  { %v1834_v57 = vor.u32 %v2115_v53, %v1831_v54  ;;  %1188 = vmatmul.bf16.vlgmr.msra.gmra.mxu3 %v2770_v62  ;;  %v1879_v53 = vld [vmem:[#allocation14 + $0x118] sm:$0xf0]  ;;  %v1765_v54 = vld [vmem:[#allocation14 + $0x28] sm:$0xf] }
  0xd3   :  { %v1737_v11 = vmul.f32 -1.442695, %v625_v3  ;;  %v600_v12 = vpop.f32.mrf.mxu1  ;;  %1232 = vmatpush.bf16.msrb.mxu3 %v1994_v41  ;;  %v1861_v3 = vld [vmem:[#allocation14 + $0xe8] sm:$0xf]  ;;  %1160 = vmatpush.bf16.msra.mxu1 %v1886_v59 }
  0xd4   :  { %v1862_v8 = vor.u32 %v2125_v4, %v1861_v3  ;;  %v1957_v59 = vld [vmem:[#allocation14 + $0x1a8] sm:$0xf]  ;;  %v2113_v4 = vld [vmem:[#allocation14 + $0x94] sm:$0xf0]  ;;  %1221 = vmatpush.bf16.msrb.mxu2 %v1834_v57 }
  0xd5   :  { %2187 = vpow2.f32 %v1737_v11  ;;  %v1813_v3 = vld [vmem:[#allocation14 + $0x88] sm:$0xf] }
  0xd6   :  { %v2186_v20 = vpop.eup %2185  ;;  %v613_v21 = vpop.f32.mrf.mxu2  ;;  %1193 = vmatpush.bf16.msrb.mxu0 %v1862_v8  ;;  %v1814_v15 = vor.u32 %v2113_v4, %v1813_v3 }
  0xd7   :  { %v2719_v26 = vadd.f32 1.0, %v2186_v20  ;;  %v626_v27 = vpop.f32.mrf.mxu3  ;;  %1233 = vmatpush.bf16.msrb.mxu3 %v1978_v60  ;;  %v2147_v20 = vld [vmem:[#allocation14 + $0x1ac] sm:$0xf]  ;;  %1161 = vmatpush.bf16.msra.mxu1 %v1870_v17  ;;  %v2149_v60 = vld [vmem:[#allocation14 + $0x1b4] sm:$0xf0] }
  0xd8   :  { %v1962_v29 = vor.u32 %v2147_v20, %v1959_v24  ;;  %v1958_v63 = vor.u32 %v2149_v60, %v1957_v59  ;;  %v2145_v17 = vld [vmem:[#allocation14 + $0x194] sm:$0xf0]  ;;  %v181_v20 = vld [vmem:[#allocation8] sm:$0xff]  ;;  %1222 = vmatpush.bf16.msrb.mxu2 %v1818_v16  ;;  %v1767_v59 = vld [vmem:[#allocation14 + $0x38] sm:$0xf0] }
  0xd9   :  { %2189 = vrcp.f32 %v2719_v26  ;;  %v695_v45 = vand.u32 2147483648, %v2719_v26  ;;  %v693_v56 = vand.u32 2147483647, %v2719_v26  ;;  %vm689_vm0 = vweird.f32 %v2719_v26 }
  0xda   :  { %1162 = vmatmul.bf16.vlgmr.msra.gmra.mxu1 %v2770_v62 }
  0xdb   :  { %v2188_v40 = vpop.eup %2187  ;;  %v2734_v1 = vor.u32 1.1754944e-38, %v695_v45  ;;  %vm2748_vm4 = vcmp.eq.f32.partialorder %v693_v56, 8.507059e+37  ;;  %1206 = vmatpush.bf16.msrb.mxu1 %v1990_v23  ;;  %1234 = vmatpush.bf16.msrb.mxu3 %v1962_v29  ;;  %v1943_v45 = vld [vmem:[#allocation14 + $0x198] sm:$0xf0]  ;;  %v1830_v56 = vor.u32 %v2117_v50, %v1829_v46  ;;  %v2137_v46 = vld [vmem:[#allocation14 + $0x154] sm:$0xf0] }
  0xdc   :  { %v2722_v44 = vadd.f32 1.0, %v2188_v40  ;;  %v2143_v40 = vld [vmem:[#allocation14 + $0x18c] sm:$0xf] }
  0xdd   :  { %v1946_v49 = vor.u32 %v2143_v40, %v1943_v45  ;;  %v2103_v40 = vld [vmem:[#allocation14 + $0x4c] sm:$0xf]  ;;  %v1909_v45 = vld [vmem:[#allocation14 + $0x148] sm:$0xf] }
  0xde   :  { %2191 = vrcp.f32 %v2722_v44  ;;  %v712_v5 = vand.u32 2147483647, %v2722_v44  ;;  %v714_v11 = vand.u32 2147483648, %v2722_v44  ;;  %vm708_vm3 = vweird.f32 %v2722_v44  ;;  %v2127_v50 = vld [vmem:[#allocation14 + $0x10c] sm:$0xf] }
  0xdf   :  { %v2728_v58 = vpop.eup %2189  ;;  %1235 = vmatpush.bf16.msrb.mxu3 %v1946_v49  ;;  %v1910_v57 = vor.u32 %v2137_v46, %v1909_v45  ;;  %v1882_v60 = vor.u32 %v2127_v50, %v1879_v53  ;;  %v2163_v45 = vld [vmem:[#allocation17 + $0x28] sm:$0xff] }
  0xe0   :  { %v685_v0 = vmul.f32 %v2728_v58, %v2719_v26  ;;  %vm690_vm1 = vweird.f32 %v2728_v58  ;;  %v2121_v26 = vld [vmem:[#allocation14 + $0xd4] sm:$0xf0]  ;;  %v715_v35 = vor.u32 1.1754944e-38, %v714_v11  ;;  %vm2764_vm7 = vcmp.eq.f32.partialorder %v712_v5, 8.507059e+37  ;;  %v1941_v11 = vld [vmem:[#allocation14 + $0x188] sm:$0xf] }
  0xe1   :  { %vm2743_vm2 = vmor %vm689_vm0, %vm690_vm1  ;;  %v1846_v30 = vor.u32 %v2121_v26, %v1845_v25  ;;  %v1942_v23 = vor.u32 %v2145_v17, %v1941_v11  ;;  %v1914_v25 = vor.u32 %v2135_v18, %v1911_v13  ;;  %v2109_v26 = vld [vmem:[#allocation14 + $0x74] sm:$0xf0]  ;;  %v1877_v11 = vld [vmem:[#allocation14 + $0x108] sm:$0xf] }
  0xe2   :  { %v686_v12 = vsub.f32 1.0, %v685_v0  ;;  %v1927_v0 = vld [vmem:[#allocation14 + $0x178] sm:$0xf0] }
  0xe3   :  { %1194 = vmatpush.bf16.msrb.mxu0 %v1846_v30  ;;  %v1930_v8 = vor.u32 %v2139_v61, %v1927_v0  ;;  %v1893_v61 = vld [vmem:[#allocation14 + $0x128] sm:$0xf] }
  0xe4   :  { %v2752_v21 = vpop.eup %2191  ;;  %v687_v22 = vmul.f32 %v2728_v58, %v686_v12 }
  0xe5   :  { %v704_v27 = vmul.f32 %v2752_v21, %v2722_v44  ;;  %vm709_vm5 = vweird.f32 %v2752_v21  ;;  %v1974_v44 = vor.u32 %v2153_v39, %v1973_v33  ;;  %1236 = vmatpush.bf16.msrb.mxu3 %v1930_v8  ;;  %v2105_v39 = vld [vmem:[#allocation14 + $0x54] sm:$0xf0]  ;;  %v2095_v8 = vld [vmem:[#allocation14 + $0xc] sm:$0xf] }
  0xe6   :  { %vm2760_vm6 = vmor %vm708_vm3, %vm709_vm5  ;;  %v688_v43 = vadd.f32 %v2728_v58, %v687_v22 }
  0xe7   :  { %v637_v28 = vpop.f32.mrf.mxu0  ;;  %v705_v41 = vsub.f32 1.0, %v704_v27  ;;  %1207 = vmatpush.bf16.msrb.mxu1 %v1974_v44  ;;  %1195 = vmatpush.bf16.msrb.mxu0 %v1830_v56  ;;  %v2107_v27 = vld [vmem:[#allocation14 + $0x6c] sm:$0xf]  ;;  %v1783_v44 = vld [vmem:[#allocation14 + $0x58] sm:$0xf0] }
  0xe8   :  { %v638_v36 = vadd.f32 %v637_v28, %v250_v55  ;;  %v692_v5 = vsel %vm2743_vm2, %v2728_v58, %v688_v43  ;;  %v1802_v33 = vor.u32 %v2107_v27, %v1799_v31  ;;  %v1786_v49 = vor.u32 %v2103_v40, %v1783_v44  ;;  %v2099_v56 = vld [vmem:[#allocation14 + $0x2c] sm:$0xf]  ;;  %v811_v31 = vld [vmem:[#allocation15] sm:$0xf] }
  0xe9   :  { %v650_v42 = vpop.f32.mrf.mxu1  ;;  %v706_v55 = vmul.f32 %v2752_v21, %v705_v41  ;;  %v697_v14 = vsel %vm2748_vm4, %v2734_v1, %v692_v5  ;;  %1237 = vmatpush.bf16.msrb.mxu3 %v1914_v25  ;;  %v1770_v4 = vor.u32 %v2099_v56, %v1767_v59  ;;  %v1749_v5 = vld [vmem:[#allocation14 + $0x8] sm:$0xf] }
  0xea   :  { %v651_v48 = vadd.f32 %v650_v42, %v638_v36  ;;  %v1895_v36 = vld [vmem:[#allocation14 + $0x138] sm:$0xf0]  ;;  %1223 = vmatpush.bf16.msrb.mxu2 %v1802_v33 }
  0xeb   :  { %v707_v6 = vadd.f32 %v2752_v21, %v706_v55  ;;  %1208 = vmatpush.bf16.msrb.mxu1 %v1958_v63  ;;  %1196 = vmatpush.bf16.msrb.mxu0 %v1814_v15  ;;  %v2101_v55 = vld [vmem:[#allocation14 + $0x34] sm:$0xf0]  ;;  %v1754_v15 = vor.u32 %v2095_v8, %v1751_v9  ;;  %v2159_v9 = vld [vmem:[#allocation17 + $0x8] sm:$0xff] }
  0xec   :  { %2193 = vtanh.f32 %v651_v48  ;;  %v1782_v48 = vor.u32 %v2105_v39, %v1781_v38  ;;  %v2133_v63 = vld [vmem:[#allocation14 + $0x134] sm:$0xf0]  ;;  %v1766_v3 = vor.u32 %v2101_v55, %v1765_v54  ;;  %v816_v54 = vperm.slane %v811_v31, 3  ;;  %v2161_v55 = vld [vmem:[#allocation17 + $0x18] sm:$0xff] }
  0xed   :  { %v711_v58 = vsel %vm2760_vm6, %v2752_v21, %v707_v6  ;;  %v1797_v21 = vld [vmem:[#allocation14 + $0x68] sm:$0xf]  ;;  %v2097_v6 = vld [vmem:[#allocation14 + $0x14] sm:$0xf0]  ;;  %v1894_v10 = vor.u32 %v2133_v63, %v1893_v61 }
  0xee   :  { %v663_v7 = vpop.f32.mrf.mxu2  ;;  %v1798_v30 = vor.u32 %v2109_v26, %v1797_v21  ;;  %1224 = vmatpush.bf16.msrb.mxu2 %v1786_v49  ;;  %v2162_v49 = vld [vmem:[#allocation17 + $0x20] sm:$0xff] }
  0xef   :  { %v664_v12 = vadd.f32 %v663_v7, %v251_v2  ;;  %v676_v51 = vpop.f32.mrf.mxu3  ;;  %v639_v19 = vpop.f32.mrf.mxu0  ;;  %v716_v2 = vsel %vm2764_vm7, %v715_v35, %v711_v58  ;;  %v2131_v35 = vld [vmem:[#allocation14 + $0x12c] sm:$0xf]  ;;  %1209 = vmatpush.bf16.msrb.mxu1 %v1942_v23 }
  0xf0   :  { %v738_v1 = vmul.f32 %v716_v2, %v181_v20  ;;  %v1898_v43 = vor.u32 %v2131_v35, %v1895_v36  ;;  %1197 = vmatpush.bf16.msrb.mxu0 %v1798_v30  ;;  %v814_v36 = vperm.slane %v811_v31, 1 }
  0xf1   :  { %v677_v22 = vadd.f32 %v676_v51, %v664_v12  ;;  %v652_v24 = vpop.f32.mrf.mxu1  ;;  %v2129_v12 = vld [vmem:[#allocation14 + $0x114] sm:$0xf0]  ;;  %v1750_v51 = vor.u32 %v2097_v6, %v1749_v5 }
  0xf2   :  { %v2194_v28 = vpop.eup %2193  ;;  %1238 = vmatpush.bf16.msrb.mxu3 %v1898_v43  ;;  %1225 = vmatpush.bf16.msrb.mxu2 %v1770_v4  ;;  %v1878_v16 = vor.u32 %v2129_v12, %v1877_v11 }
  0xf3   :  { %v1738_v29 = vmul.f32 -1.442695, %v677_v22  ;;  %v739_v32 = vmul.f32 %v2194_v28, %v697_v14  ;;  %1210 = vmatpush.bf16.msrb.mxu1 %v1926_v37  ;;  %v2165_v37 = vld [vmem:[#allocation17 + $0x38] sm:$0xff] }
  0xf4   :  { %1198 = vmatpush.bf16.msrb.mxu0 %v1782_v48 }
  0xf5   :  { %2195 = vpow2.f32 %v1738_v29  ;;  %v740_v41 = vadd.f32 %v739_v32, %v738_v1  ;;  %v813_v1 = vperm.slane %v811_v31, 0 }
  0xf6   :  { %v665_v42 = vpop.f32.mrf.mxu2  ;;  %1239 = vmatpush.bf16.msrb.mxu3 %v1882_v60  ;;  %1226 = vmatpush.bf16.msrb.mxu2 %v1754_v15  ;;  %v2158_v15 = vld [vmem:[#allocation17] sm:$0xff] }
  0xf7   :  { %v678_v47 = vpop.f32.mrf.mxu3  ;;  %1309 = vst [vmem:[#allocation21] sm:$0xff] %v740_v41  ;;  %1211 = vmatpush.bf16.msrb.mxu1 %v1910_v57  ;;  %v815_v57 = vperm.slane %v811_v31, 2 }
  0xf8   :  { %1199 = vmatpush.bf16.msrb.mxu0 %v1766_v3 }
  0xf9   :  { %1240 = vmatmul.bf16.vlgmr.msrb.gmra.mxu3 %v2770_v62 }
  0xfb   :  { %v2196_v0 = vpop.eup %2195  ;;  %1212 = vmatpush.bf16.msrb.mxu1 %v1894_v10 }
  0xfc   :  { %v722_v7 = vadd.f32 1.0, %v2196_v0  ;;  %1200 = vmatpush.bf16.msrb.mxu0 %v1750_v51  ;;  %v2160_v0 = vld [vmem:[#allocation17 + $0x10] sm:$0xff] }
  0xfe   :  { %2197 = vrcp.f32 %v722_v7  ;;  %v734_v58 = vand.u32 2147483648, %v722_v7  ;;  %v732_v20 = vand.u32 2147483647, %v722_v7  ;;  %vm728_vm9 = vweird.f32 %v722_v7 }
  0xff   :  { %1213 = vmatpush.bf16.msrb.mxu1 %v1878_v16  ;;  %2199 = vtanh.f32 %v740_v41  ;;  %v2164_v41 = vld [vmem:[#allocation17 + $0x30] sm:$0xff] }
 0x100   :  { %v735_v2 = vor.u32 1.1754944e-38, %v734_v58  ;;  %vm733_vm11 = vcmp.eq.f32.partialorder %v732_v20, 8.507059e+37 }
 0x102   :  { %1214 = vmatmul.bf16.vlgmr.msrb.gmra.mxu1 %v2770_v62 }
 0x104   :  { %v2198_v17 = vpop.eup %2197 }
 0x105   :  { %v724_v18 = vmul.f32 %v2198_v17, %v722_v7  ;;  %vm729_vm8 = vweird.f32 %v2198_v17  ;;  %v2200_v23 = vpop.eup %2199 }
 0x106   :  { %vm730_vm10 = vmor %vm728_vm9, %vm729_vm8 }
 0x107   :  { %v725_v13 = vsub.f32 1.0, %v724_v18 }
 0x109   :  { %v726_v19 = vmul.f32 %v2198_v17, %v725_v13 }
 0x10b   :  { %v727_v14 = vadd.f32 %v2198_v17, %v726_v19 }
 0x10d   :  { %v731_v22 = vsel %vm730_vm10, %v2198_v17, %v727_v14 }
 0x10e   :  { %v736_v24 = vsel %vm733_vm11, %v735_v2, %v731_v22 }
 0x10f   :  { %v742_v25 = vmul.f32 %v2200_v23, %v736_v24  ;;  %v746_v24 = vld [vmem:[#allocation11] sm:$0xff] }
 0x111   :  { %v743_v21 = vpack.c.bf16 %v742_v25, %v742_v25  ;;  %1308 = vst [vmem:[#allocation19] sm:$0xff] %v742_v25 }
 0x112   :  { %1418 = dma.vmem_to_hbm [thread:$0]  %s1414_s29, 128, %s1416_s27, [#allocation20]  }
 0x113   :  { %1149 = vmatmul.bf16.vlgmr.msra.gmra.mxu0 %v743_v21  ;;  %1175 = vmatmul.bf16.vlgmr.msra.gmra.mxu2 %v743_v21  ;;  %1429 = dma.vmem_to_hbm [thread:$0]  %s1425_s19, 128, %s1427_s12, [#allocation20]  }
 0x114   :  { %1383 = vmatpush.bf16.msra.mxu0 %v2165_v37 }
 0x118   :  { %1384 = vmatpush.bf16.msra.mxu0 %v2164_v41 }
 0x11c   :  { %1385 = vmatpush.bf16.msra.mxu0 %v2163_v45 }
 0x120   :  { %1386 = vmatpush.bf16.msra.mxu0 %v2162_v49 }
 0x123   :  { %1201 = vmatmul.bf16.vlgmr.msrb.gmra.mxu0 %v743_v21  ;;  %1227 = vmatmul.bf16.vlgmr.msrb.gmra.mxu2 %v743_v21 }
 0x124   :  { %1387 = vmatpush.bf16.msra.mxu0 %v2161_v55 }
 0x128   :  { %1388 = vmatpush.bf16.msra.mxu0 %v2160_v0 }
 0x12c   :  { %1389 = vmatpush.bf16.msra.mxu0 %v2159_v9 }
 0x130   :  { %1390 = vmatpush.bf16.msra.mxu0 %v2158_v15 }
 0x155   :  { %v1189_v62 = vpop.f32.mrf.mxu3 }
 0x157   :  { %v1163_v26 = vpop.f32.mrf.mxu1 }
 0x15d   :  { %v1191_v28 = vpop.f32.mrf.mxu3 }
 0x15f   :  { %v1165_v27 = vpop.f32.mrf.mxu1 }
 0x17c   :  { %v1241_v29 = vpop.f32.mrf.mxu3 }
 0x17f   :  { %v1215_v30 = vpop.f32.mrf.mxu1 }
 0x184   :  { %v1243_v52 = vpop.f32.mrf.mxu3 }
 0x187   :  { %v1217_v32 = vpop.f32.mrf.mxu1 }
 0x190   :  { %v1150_v33 = vpop.f32.mrf.mxu0 }
 0x191   :  { %v1151_v34 = vadd.f32 %v1150_v33, %v813_v1 }
 0x193   :  { %v1164_v35 = vadd.f32 %v1163_v26, %v1151_v34 }
 0x195   :  { %v1995_v38 = vmul.f32 -1.442695, %v1164_v35 }
 0x196   :  { %v1176_v39 = vpop.f32.mrf.mxu2 }
 0x197   :  { %2201 = vpow2.f32 %v1995_v38  ;;  %v1177_v40 = vadd.f32 %v1176_v39, %v814_v36 }
 0x198   :  { %v1152_v42 = vpop.f32.mrf.mxu0 }
 0x199   :  { %v1190_v43 = vadd.f32 %v1189_v62, %v1177_v40 }
 0x19b   :  { %v1996_v44 = vmul.f32 -1.442695, %v1190_v43 }
 0x19d   :  { %v2202_v46 = vpop.eup %2201  ;;  %2203 = vpow2.f32 %v1996_v44  ;;  %v2184_v44 = vld [vmem:[%s2818_s10] ss:$0 sm:$0xff] }
 0x19e   :  { %v1248_v47 = vadd.f32 1.0, %v2202_v46  ;;  %v1178_v48 = vpop.f32.mrf.mxu2 }
 0x1a0   :  { %2205 = vrcp.f32 %v1248_v47  ;;  %v1202_v50 = vpop.f32.mrf.mxu0  ;;  %v1260_v16 = vand.u32 2147483648, %v1248_v47  ;;  %vm1254_vm13 = vweird.f32 %v1248_v47  ;;  %v1258_v13 = vand.u32 2147483647, %v1248_v47 }
 0x1a1   :  { %v1203_v3 = vadd.f32 %v1202_v50, %v815_v57 }
 0x1a2   :  { %v1261_v2 = vor.u32 1.1754944e-38, %v1260_v16  ;;  %vm1259_vm1 = vcmp.eq.f32.partialorder %v1258_v13, 8.507059e+37 }
 0x1a3   :  { %v2204_v53 = vpop.eup %2203  ;;  %v1216_v11 = vadd.f32 %v1215_v30, %v1203_v3 }
 0x1a4   :  { %v1267_v56 = vadd.f32 1.0, %v2204_v53 }
 0x1a6   :  { %v2206_v59 = vpop.eup %2205  ;;  %2207 = vrcp.f32 %v1267_v56  ;;  %v1228_v60 = vpop.f32.mrf.mxu2  ;;  %v1279_v58 = vand.u32 2147483648, %v1267_v56  ;;  %v1277_v14 = vand.u32 2147483647, %v1267_v56  ;;  %vm1273_vm0 = vweird.f32 %v1267_v56 }
 0x1a7   :  { %v1250_v61 = vmul.f32 %v2206_v59, %v1248_v47  ;;  %v1229_v63 = vadd.f32 %v1228_v60, %v816_v54  ;;  %vm1255_vm12 = vweird.f32 %v2206_v59 }
 0x1a8   :  { %v1204_v4 = vpop.f32.mrf.mxu0  ;;  %vm1256_vm14 = vmor %vm1254_vm13, %vm1255_vm12  ;;  %v1280_v21 = vor.u32 1.1754944e-38, %v1279_v58  ;;  %vm1278_vm3 = vcmp.eq.f32.partialorder %v1277_v14, 8.507059e+37 }
 0x1a9   :  { %v1251_v5 = vsub.f32 1.0, %v1250_v61  ;;  %v1242_v6 = vadd.f32 %v1241_v29, %v1229_v63 }
 0x1ab   :  { %v1252_v7 = vmul.f32 %v2206_v59, %v1251_v5  ;;  %v1997_v8 = vmul.f32 -1.442695, %v1242_v6 }
 0x1ac   :  { %v2208_v10 = vpop.eup %2207 }
 0x1ad   :  { %v1269_v12 = vmul.f32 %v2208_v10, %v1267_v56  ;;  %v1253_v51 = vadd.f32 %v2206_v59, %v1252_v7  ;;  %2209 = vpow2.f32 %v1997_v8  ;;  %vm1274_vm15 = vweird.f32 %v2208_v10 }
 0x1ae   :  { %v1230_v17 = vpop.f32.mrf.mxu2  ;;  %2211 = vtanh.f32 %v1216_v11  ;;  %vm1275_vm2 = vmor %vm1273_vm0, %vm1274_vm15 }
 0x1af   :  { %v1270_v18 = vsub.f32 1.0, %v1269_v12  ;;  %v1257_v20 = vsel %vm1256_vm14, %v2206_v59, %v1253_v51 }
 0x1b0   :  { %v1262_v25 = vsel %vm1259_vm1, %v1261_v2, %v1257_v20 }
 0x1b1   :  { %v1271_v19 = vmul.f32 %v2208_v10, %v1270_v18 }
 0x1b3   :  { %v2210_v22 = vpop.eup %2209  ;;  %v1272_v23 = vadd.f32 %v2208_v10, %v1271_v19 }
 0x1b4   :  { %v1287_v26 = vadd.f32 1.0, %v2210_v22  ;;  %v2212_v27 = vpop.eup %2211 }
 0x1b5   :  { %v1276_v62 = vsel %vm1275_vm2, %v2208_v10, %v1272_v23  ;;  %v1304_v30 = vmul.f32 %v2212_v27, %v1262_v25 }
 0x1b6   :  { %v1281_v28 = vsel %vm1278_vm3, %v1280_v21, %v1276_v62  ;;  %2213 = vrcp.f32 %v1287_v26  ;;  %v1299_v33 = vand.u32 2147483648, %v1287_v26  ;;  %v1297_v35 = vand.u32 2147483647, %v1287_v26 }
 0x1b7   :  { %v1303_v29 = vmul.f32 %v1281_v28, %v746_v24  ;;  %vm1293_vm5 = vweird.f32 %v1287_v26 }
 0x1b8   :  { %v1300_v37 = vor.u32 1.1754944e-38, %v1299_v33  ;;  %vm1298_vm7 = vcmp.eq.f32.partialorder %v1297_v35, 8.507059e+37 }
 0x1b9   :  { %v1305_v31 = vadd.f32 %v1304_v30, %v1303_v29 }
 0x1bb   :  { %1311 = vst [vmem:[#allocation24] sm:$0xff] %v1305_v31  ;;  %2215 = vtanh.f32 %v1305_v31 }
 0x1bc   :  { %v2214_v52 = vpop.eup %2213 }
 0x1bd   :  { %v1289_v1 = vmul.f32 %v2214_v52, %v1287_v26  ;;  %vm1294_vm4 = vweird.f32 %v2214_v52 }
 0x1be   :  { %vm1295_vm6 = vmor %vm1293_vm5, %vm1294_vm4 }
 0x1bf   :  { %v1290_v32 = vsub.f32 1.0, %v1289_v1 }
 0x1c1   :  { %v1291_v34 = vmul.f32 %v2214_v52, %v1290_v32  ;;  %v2216_v39 = vpop.eup %2215 }
 0x1c3   :  { %v1292_v36 = vadd.f32 %v2214_v52, %v1291_v34 }
 0x1c5   :  { %v1296_v38 = vsel %vm1295_vm6, %v2214_v52, %v1292_v36 }
 0x1c6   :  { %v1301_v40 = vsel %vm1298_vm7, %v1300_v37, %v1296_v38 }
 0x1c7   :  { %v1307_v41 = vmul.f32 %v2216_v39, %v1301_v40 }
 0x1c9   :  { %v1312_v42 = vpack.c.bf16 %v1307_v41, %v1307_v41  ;;  %1310 = vst [vmem:[#allocation22] sm:$0xff] %v1307_v41 }
 0x1ca   :  { %1440 = dma.vmem_to_hbm [thread:$0]  %s1436_s1, 128, %s1438_s0, [#allocation23]  }
 0x1cb   :  { %1313 = vst [vmem:[#allocation2] sm:$0xf] %v1312_v42  ;;  %1451 = dma.vmem_to_hbm [thread:$0]  %s1447_s25, 128, %s1449_s23, [#allocation23]  }
 0x1d2   :  { %v1314_v43 = vld [vmem:[#allocation2] sm:$0xf] }
 0x1d3   :  { %1391 = vmatmul.bf16.vlgmr.msra.gmra.mxu0 %v1314_v43 }
 0x250   :  { %v1392_v45 = vpop.f32.mrf.mxu0 }
 0x251   :  { %v1393_v46 = vadd.f32 %v2184_v44, %v1392_v45 }
 0x253   :  { %1396 = vst [vmem:[#allocation18] sm:$0xff] %v1393_v46 }
 0x254   :  { %1407 = dma.vmem_to_hbm [thread:$0]  %s1403_s7, 128, %s1405_s9, [#allocation5]  }
 0x258   :  { %v1394_v47 = vpop.f32.mrf.mxu0 }
 0x259   :  { %2563 = dma.done.wait [#allocation5], 128  }
 0x25a   :  { %2564 = vsyncadd [#allocation5], 4294967168 }
 0x25b   :  { %2565 = dma.done.wait [#allocation20], 256  }
 0x25c   :  { %2566 = vsyncadd [#allocation20], 4294967040 }
 0x25d   :  { %2567 = dma.done.wait [#allocation23], 256  }
 0x25e   :  { %2568 = vsyncadd [#allocation23], 4294967040 }
 0x25f   :  { %1472 = vsyncpa [#allocation4], 1 }
 0x260   :  { %1473 = vsyncpa [#allocation7], 1 }
 0x261   :  { %1474 = vsyncpa [#allocation10], 1 }
 0x262   :  { %1475 = vsyncpa [#allocation13], 1 }
 0x263   :  { %1476 = vsyncpa [#allocation16], 1 }
 0x264   :  { %1477 = vsyncpa [#allocation5], 1 }
 0x265   :  { %1478 = vsyncpa [#allocation20], 1 }
 0x266   :  { %1479 = vsyncpa [#allocation23], 1 }

</bundles_post_ra>
